<compile_context>
chip_gen: v7x
topology: tpu7x:2x2x1
jax: 0.10.0
libtpu: 0.0.40
codegen_flags: <defaults>
</compile_context>

<pallas_src>
import jax
import jax.numpy as jnp
from jax import lax
from jax.experimental import pallas as pl
from jax.experimental.pallas import tpu as pltpu


def _round_up(x, m):
    return ((x + m - 1) // m) * m


def _pick_tile(dim, target, granule):
    """Largest legal tile <= target for `dim`: the full dim (no padding) when it
    fits, else the biggest multiple of `granule` dividing dim, else `target`
    (caller pads)."""
    if dim <= target:
        return dim
    best = None
    for t in range(granule, target + 1, granule):
        if dim % t == 0:
            best = t
    return best if best is not None else target


def _maybe_vmem_limit(est_bytes, headroom=16 << 20, floor=24 << 20, cap=96 << 20):
    """Only override the default scoped-VMEM budget when the working set needs it."""
    if est_bytes <= floor:
        return None
    return int(min(est_bytes + headroom, cap))


def _pad_rows(x, rows):
    if x.shape[0] == rows:
        return x
    return jnp.pad(x, ((0, rows - x.shape[0]),) + ((0, 0),) * (x.ndim - 1))


def _pad_gate_cols(x, H, Hp):
    """(..., 4H) -> (..., 4Hp): zero-pad each of the i/f/g/o gate blocks."""
    if Hp == H:
        return x
    lead = x.shape[:-1]
    x4 = x.reshape(lead + (4, H))
    x4 = jnp.pad(x4, [(0, 0)] * (len(lead) + 1) + [(0, Hp - H)])
    return x4.reshape(lead + (4 * Hp,))


def _pick_time_block(T, time_block):
    """Time steps per grid step: multiples of 8 (sublane-aligned batch-first
    output blocks) up to `time_block`, plus the whole sequence when it is small
    enough to keep the gate-pre block resident.  Minimise padded steps, then
    maximise the block (per-grid-step overhead amortization)."""
    cands = set(range(8, min(T, time_block) + 1, 8))
    if T <= 2 * time_block:
        cands.add(T)
    if not cands:
        cands.add(T)
    Tt = min(cands, key=lambda t: (_round_up(T, t), -t))
    return Tt, _round_up(T, Tt)


# ---------------------------------------------------------------------------
# Tiled matmul + bias:  out = a @ b + bias   (bf16 MXU operands, f32 accum)
# ---------------------------------------------------------------------------
def _matmul_bias_kernel_single_k(a_ref, b_ref, bias_ref, o_ref):
    # K fits one tile: no accumulator round-trip, write the tile directly.
    acc = jnp.dot(a_ref[...].astype(jnp.bfloat16),
                  b_ref[...].astype(jnp.bfloat16),
                  preferred_element_type=jnp.float32)
    o_ref[...] = (acc + bias_ref[...]).astype(o_ref.dtype)


def _matmul_bias_kernel_multi_k(a_ref, b_ref, bias_ref, o_ref, acc_ref):
    @pl.when(pl.program_id(2) == 0)
    def _():
        acc_ref[...] = jnp.zeros_like(acc_ref)

    acc_ref[...] += jnp.dot(a_ref[...].astype(jnp.bfloat16),
                            b_ref[...].astype(jnp.bfloat16),
                            preferred_element_type=jnp.float32)

    @pl.when(pl.program_id(2) == pl.num_programs(2) - 1)
    def _():
        o_ref[...] = (acc_ref[...] + bias_ref[...]).astype(o_ref.dtype)


def pallas_matmul_bias(a, b, bias, *, out_dtype=jnp.float32,
                       max_tm=256, max_tn=512, max_tk=1024, tk=512):
    """a: (M, K), b: (K, N), bias: (1, N) -> (M, N) out_dtype.

    MXU operands go in as bf16 (f32 accumulation).  Tiles are chosen to divide
    M / N where possible so large activation matrices avoid jnp.pad copies;
    only the K axis is zero-padded when it must be split."""
    M, K = a.shape
    K2, N = b.shape
    assert K == K2 and bias.shape == (1, N)

    tm = _pick_tile(M, max_tm, 8)
    tn = _pick_tile(N, max_tn, 128)
    Mp, Np = _round_up(M, tm), _round_up(N, tn)

    single_k = K <= max_tk
    tk_ = K if single_k else tk
    Kp = K if single_k else _round_up(K, tk_)

    a_p = a if (Mp, Kp) == (M, K) else jnp.pad(a, ((0, Mp - M), (0, Kp - K)))
    b_p = b if (Kp, Np) == (K, N) else jnp.pad(b, ((0, Kp - K), (0, Np - N)))
    bias_p = bias if Np == N else jnp.pad(bias, ((0, 0), (0, Np - N)))

    cost = pl.CostEstimate(
        flops=2 * Mp * Np * Kp,
        transcendentals=0,
        bytes_accessed=(Mp * Kp * a_p.dtype.itemsize + Kp * Np * b_p.dtype.itemsize
                        + Np * bias_p.dtype.itemsize
                        + Mp * Np * jnp.dtype(out_dtype).itemsize))

    est_vmem = 2 * (tm * tk_ * a_p.dtype.itemsize + tk_ * tn * b_p.dtype.itemsize
                    + tm * tn * jnp.dtype(out_dtype).itemsize + tn * 4)
    if not single_k:
        est_vmem += tm * tn * 4

    if single_k:
        grid = (Mp // tm, Np // tn)
        kernel = _matmul_bias_kernel_single_k
        in_specs = [pl.BlockSpec((tm, tk_), lambda i, j: (i, 0)),
                    pl.BlockSpec((tk_, tn), lambda i, j: (0, j)),
                    pl.BlockSpec((1, tn), lambda i, j: (0, j))]
        out_specs = pl.BlockSpec((tm, tn), lambda i, j: (i, j))
        scratch = []
        dims = ("parallel", "parallel")
    else:
        grid = (Mp // tm, Np // tn, Kp // tk_)
        kernel = _matmul_bias_kernel_multi_k
        in_specs = [pl.BlockSpec((tm, tk_), lambda i, j, k: (i, k)),
                    pl.BlockSpec((tk_, tn), lambda i, j, k: (k, j)),
                    pl.BlockSpec((1, tn), lambda i, j, k: (0, j))]
        out_specs = pl.BlockSpec((tm, tn), lambda i, j, k: (i, j))
        scratch = [pltpu.VMEM((tm, tn), jnp.float32)]
        dims = ("parallel", "parallel", "arbitrary")

    out = pl.pallas_call(
        kernel,
        out_shape=jax.ShapeDtypeStruct((Mp, Np), out_dtype),
        grid_spec=pltpu.PrefetchScalarGridSpec(
            num_scalar_prefetch=0, grid=grid,
            in_specs=in_specs, out_specs=out_specs, scratch_shapes=scratch),
        compiler_params=pltpu.CompilerParams(
            dimension_semantics=dims,
            vmem_limit_bytes=_maybe_vmem_limit(est_vmem)),
        cost_estimate=cost,
    )(a_p, b_p, bias_p)
    return out[:M, :N] if (Mp, Np) != (M, N) else out


# ---------------------------------------------------------------------------
# Recurrent LSTM kernel: Tt time steps per grid step, h/c carried in vregs,
# gate-input half precomputed (bf16), W_hh single-buffered in VMEM scratch.
# ---------------------------------------------------------------------------
def _lstm_recurrent_kernel(gp_ref, whh_hbm, h_out_ref, whh_vmem, h_sc, c_sc,
                           dma_sem):
    """Grid = (batch_blocks [parallel], time_blocks [arbitrary]).

    gp_ref   : (Tt, Bb, 4Hp) bf16   precomputed x_t @ W_ih^T + (b_ih + b_hh)
    whh_hbm  : (Hp, 4Hp)     f32    hidden->gates weights (HBM, copied once)
    h_out_ref: (Bb, Tt, Hp)  f32    hidden states, written batch-first
    whh_vmem : (Hp, 4Hp)     f32    single-buffered VMEM copy of W_hh^T
    h_sc,c_sc: (Bb, Hp)      f32    recurrent state carried across time blocks
    """
    tb = pl.program_id(1)          # time-block index (recurrent axis)
    Hp = h_sc.shape[-1]
    Tt = gp_ref.shape[0]

    @pl.when(tb == 0)
    def _():
        # Grid-invariant weight: one DMA per batch block into a single VMEM
        # buffer instead of letting BlockSpec double-buffer it every grid step.
        cp = pltpu.make_async_copy(whh_hbm, whh_vmem, dma_sem)
        cp.start()
        cp.wait()
        h_sc[...] = jnp.zeros_like(h_sc)
        c_sc[...] = jnp.zeros_like(c_sc)

    h = h_sc[...]
    c = c_sc[...]
    # Static (fully unrolled) time loop: indices are Python ints, so gate-pre
    # reads and hidden stores are static slices; h/c stay in vregs across steps.
    # TODO(synk): for very large H, sweep partial unroll here (vreg pressure).
    for i in range(Tt):
        # Single (Bb,Hp)x(Hp,4Hp) MXU push per step; bf16 input half upcast.
        gates = gp_ref[i].astype(jnp.float32) + jnp.dot(
            h, whh_vmem[...], preferred_element_type=jnp.float32)
        # PyTorch gate order i, f, g, o; Hp is a multiple of 128, so all four
        # slices are lane-aligned.
        i_g = jax.nn.sigmoid(gates[:, 0 * Hp:1 * Hp])
        f_g = jax.nn.sigmoid(gates[:, 1 * Hp:2 * Hp])
        g_g = jnp.tanh(gates[:, 2 * Hp:3 * Hp])
        o_g = jax.nn.sigmoid(gates[:, 3 * Hp:4 * Hp])
        c = f_g * c + i_g * g_g
        h = o_g * jnp.tanh(c)
        h_out_ref[:, i, :] = h         # batch-first, lane-dense (Hp) store
    h_sc[...] = h
    c_sc[...] = c


# ---------------------------------------------------------------------------
# Forward pass matching DecoderRNN.forward(features, captions)
# ---------------------------------------------------------------------------
def decoder_rnn_forward(features, captions, params, *, time_block=16,
                        batch_blocks=1):
    """features: (B, E) f32, captions: (B, S) int32 -> logits (B, S, V) f32.

    batch_blocks: set to 2 on v7x (two TensorCores) to shard the recurrent
    kernel's batch axis; keep 1 on single-core v5e / v6e.
    """
    B, E = features.shape
    S = captions.shape[1]
    H = params["w_hh_t"].shape[0]
    V = params["w_out_t"].shape[1]
    T = S
    Hp = _round_up(H, 128)   # lane-align hidden: gate slices & stores are dense

    # ---- parameter prep (glue): pad hidden to Hp, cast MXU operands to bf16 ---
    w_ih = _pad_gate_cols(params["w_ih_t"], H, Hp).astype(jnp.bfloat16)   # (E,4Hp)
    bias = _pad_gate_cols(params["bias"], H, Hp)                          # (1,4Hp) f32
    w_hh = _pad_gate_cols(_pad_rows(params["w_hh_t"], Hp), H, Hp)         # (Hp,4Hp) f32
    w_out = _pad_rows(params["w_out_t"], Hp).astype(jnp.bfloat16)         # (Hp,V)

    # ---- glue: embedding gather + concat, built directly time-major ----------
    # (only the tiny int32 caption matrix is transposed — no (B,T,E) transpose)
    emb_tbl = params["embed"].astype(jnp.bfloat16)
    embeds_tm = jnp.take(emb_tbl, captions[:, :-1].T, axis=0)            # (T-1,B,E)
    seq_tm = jnp.concatenate(
        [features.astype(jnp.bfloat16)[None], embeds_tm], axis=0)        # (T,B,E)

    # ---- (1) hoisted input projection: one bf16 GEMM over all time steps -----
    gp = pallas_matmul_bias(seq_tm.reshape(T * B, E), w_ih, bias,
                            out_dtype=jnp.bfloat16)                       # (T*B,4Hp)
    gp = gp.reshape(T, B, 4 * Hp)

    # ---- (2) recurrent kernel -------------------------------------------------
    Tt, Tp = _pick_time_block(T, time_block)
    if Tp != T:   # trailing padded steps run on zero inputs and are discarded
        gp = jnp.pad(gp, ((0, Tp - T), (0, 0), (0, 0)))
    if batch_blocks > 1 and B % batch_blocks == 0 and (B // batch_blocks) % 8 == 0:
        Bb = B // batch_blocks
    else:
        Bb = B
    nb, nt = B // Bb, Tp // Tt

    cost = pl.CostEstimate(
        flops=2 * Tp * B * Hp * 4 * Hp + 10 * Tp * B * Hp,
        transcendentals=5 * Tp * B * Hp,
        bytes_accessed=Tp * B * 4 * Hp * 2 + Hp * 4 * Hp * 4 + B * Tp * Hp * 4)

    est_vmem = (2 * Tt * Bb * 4 * Hp * 2      # gate-pre blocks (bf16, x2 buffers)
                + 2 * Bb * Tt * Hp * 4        # hidden output blocks (f32, x2)
                + Hp * 4 * Hp * 4             # single-buffered W_hh
                + 2 * Bb * Hp * 4)            # h/c carries

    h_all = pl.pallas_call(
        _lstm_recurrent_kernel,
        out_shape=jax.ShapeDtypeStruct((B, Tp, Hp), jnp.float32),
        grid_spec=pltpu.PrefetchScalarGridSpec(
            num_scalar_prefetch=0,
            grid=(nb, nt),
            in_specs=[
                pl.BlockSpec((Tt, Bb, 4 * Hp), lambda b, t: (t, b, 0)),  # gate-pre
                pl.BlockSpec(memory_space=pl.ANY),                       # W_hh^T (HBM)
            ],
            out_specs=pl.BlockSpec((Bb, Tt, Hp), lambda b, t: (b, t, 0)),
            scratch_shapes=[
                pltpu.VMEM((Hp, 4 * Hp), jnp.float32),    # W_hh copy (single buf)
                pltpu.VMEM((Bb, Hp), jnp.float32),        # h carry
                pltpu.VMEM((Bb, Hp), jnp.float32),        # c carry
                pltpu.SemaphoreType.DMA(()),              # W_hh copy completion
            ],
        ),
        compiler_params=pltpu.CompilerParams(
            # Time axis MUST stay "arbitrary" (h/c carry across its steps);
            # the batch axis may shard across cores (v7x) when nb > 1.
            dimension_semantics=("parallel", "arbitrary"),
            vmem_limit_bytes=_maybe_vmem_limit(est_vmem)),
        cost_estimate=cost,
    )(gp, w_hh)
    h_all = h_all[:, :T, :]                                               # (B,T,Hp)

    # ---- (3) hoisted vocab projection (batch-first in and out, no transpose) -
    logits = pallas_matmul_bias(h_all.reshape(B * T, Hp), w_out,
                                params["b_out"], out_dtype=jnp.float32)   # (B*T,V)
    return logits.reshape(B, T, V)


# ---------------------------------------------------------------------------
# Pure-JAX reference (lax.scan LSTM, f32) for correctness checking.
# ---------------------------------------------------------------------------
def reference_forward(features, captions, params):
    embeds = jnp.take(params["embed"], captions[:, :-1], axis=0)
    seq = jnp.concatenate([features[:, None, :], embeds], axis=1)
    B = features.shape[0]
    H = params["w_hh_t"].shape[0]

    def step(carry, x_t):
        h, c = carry
        gates = x_t @ params["w_ih_t"] + h @ params["w_hh_t"] + params["bias"]
        i_g = jax.nn.sigmoid(gates[:, 0:H])
        f_g = jax.nn.sigmoid(gates[:, H:2 * H])
        g_g = jnp.tanh(gates[:, 2 * H:3 * H])
        o_g = jax.nn.sigmoid(gates[:, 3 * H:4 * H])
        c_new = f_g * c + i_g * g_g
        h_new = o_g * jnp.tanh(c_new)
        return (h_new, c_new), h_new

    h0 = jnp.zeros((B, H), jnp.float32)
    c0 = jnp.zeros((B, H), jnp.float32)
    _, hs = lax.scan(step, (h0, c0), jnp.transpose(seq, (1, 0, 2)))
    out = hs @ params["w_out_t"] + params["b_out"]                        # (T,B,V)
    return jnp.transpose(out, (1, 0, 2))


def init_params(key, embed_size, hidden_size, vocab_size):
    ks = jax.random.split(key, 7)
    s = 0.1
    return {
        "embed":   s * jax.random.normal(ks[0], (vocab_size, embed_size), jnp.float32),
        "w_ih_t":  s * jax.random.normal(ks[1], (embed_size, 4 * hidden_size), jnp.float32),
        "w_hh_t":  s * jax.random.normal(ks[2], (hidden_size, 4 * hidden_size), jnp.float32),
        "bias":    s * jax.random.normal(ks[3], (1, 4 * hidden_size), jnp.float32),
        "w_out_t": s * jax.random.normal(ks[4], (hidden_size, vocab_size), jnp.float32),
        "b_out":   s * jax.random.normal(ks[5], (1, vocab_size), jnp.float32),
    }


if __name__ == "__main__":
    # Small shapes consistent with the module's forward.
    B, S = 8, 8            # batch, caption length
    E, H, V = 32, 32, 128  # embed_size, hidden_size, vocab_size

    key = jax.random.PRNGKey(0)
    k_feat, k_cap, k_par = jax.random.split(key, 3)

    features = jax.random.normal(k_feat, (B, E), jnp.float32)
    captions = jax.random.randint(k_cap, (B, S), 0, V, jnp.int32)
    params = init_params(k_par, E, H, V)

    fwd = jax.jit(decoder_rnn_forward)
    out = jax.block_until_ready(fwd(features, captions, params))
    assert out.shape == (B, S, V), out.shape

    ref = jax.block_until_ready(reference_forward(features, captions, params))
    max_err = float(jnp.max(jnp.abs(out - ref)))
    assert jnp.allclose(out, ref, rtol=2e-2, atol=2e-2), \
        f"mismatch vs reference (max |err| = {max_err})"

    print("KERNEL_OK")
</pallas_src>

<mosaic_0001>
module attributes {stable_mosaic.version = 11 : i64} {
  func.func @_matmul_bias_kernel_single_k(%arg0: i32, %arg1: i32, %arg2: memref<64x32xbf16, #tpu.memory_space<vmem>>, %arg3: memref<32x512xbf16, #tpu.memory_space<vmem>>, %arg4: memref<1x512xf32, #tpu.memory_space<vmem>>, %arg5: memref<64x512xbf16, #tpu.memory_space<vmem>>) attributes {dimension_semantics = [#tpu.dimension_semantics<parallel>, #tpu.dimension_semantics<parallel>], iteration_bounds = array<i64: 1, 1>, scalar_prefetch = 0 : i64, scratch_operands = 0 : i64, tpu.core_type = #tpu.core_type<tc>, window_params = [{transform_indices = @transform_0, window_bounds = array<i64: 64, 32>}, {transform_indices = @transform_1, window_bounds = array<i64: 32, 512>}, {transform_indices = @transform_2, window_bounds = array<i64: 1, 512>}, {transform_indices = @transform_3, window_bounds = array<i64: 64, 512>}]} {
    %c0 = arith.constant 0 : index
    %c0_0 = arith.constant 0 : index
    %0 = vector.load %arg2[%c0, %c0_0] : memref<64x32xbf16, #tpu.memory_space<vmem>>, vector<64x32xbf16>
    %c0_1 = arith.constant 0 : index
    %c0_2 = arith.constant 0 : index
    %1 = vector.load %arg3[%c0_1, %c0_2] : memref<32x512xbf16, #tpu.memory_space<vmem>>, vector<32x512xbf16>
    %cst = arith.constant dense<0.000000e+00> : vector<64x512xf32>
    %2 = tpu.matmul %0, %1, %cst {dimension_numbers = #tpu.dot_dimension_numbers<[1], [0], [0], [1], [0, 0, 1, 1], [], []>} : vector<64x32xbf16>, vector<32x512xbf16>, vector<64x512xf32> -> vector<64x512xf32>
    %c0_3 = arith.constant 0 : index
    %c0_4 = arith.constant 0 : index
    %3 = vector.load %arg4[%c0_3, %c0_4] : memref<1x512xf32, #tpu.memory_space<vmem>>, vector<1x512xf32>
    %4 = vector.broadcast %3 : vector<1x512xf32> to vector<64x512xf32>
    %5 = arith.addf %2, %4 : vector<64x512xf32>
    %6 = arith.truncf %5 : vector<64x512xf32> to vector<64x512xbf16>
    %c0_5 = arith.constant 0 : index
    %c0_6 = arith.constant 0 : index
    %7 = vector.load %arg5[%c0_5, %c0_6] : memref<64x512xbf16, #tpu.memory_space<vmem>>, vector<64x512xbf16>
    tpu.vector_store %arg5[%c0_5, %c0_6], %6 {strides = array<i32>} : memref<64x512xbf16, #tpu.memory_space<vmem>>, vector<64x512xbf16>,
    return
  }
  func.func @transform_0(%arg0: i32, %arg1: i32) -> (i32, i32) {
    %c0_i32 = arith.constant 0 : i32
    %c0_i32_0 = arith.constant 0 : i32
    return %arg0, %c0_i32 : i32, i32
  }
  func.func @transform_1(%arg0: i32, %arg1: i32) -> (i32, i32) {
    %c0_i32 = arith.constant 0 : i32
    %c0_i32_0 = arith.constant 0 : i32
    return %c0_i32, %arg1 : i32, i32
  }
  func.func @transform_2(%arg0: i32, %arg1: i32) -> (i32, i32) {
    %c0_i32 = arith.constant 0 : i32
    %c0_i32_0 = arith.constant 0 : i32
    return %c0_i32, %arg1 : i32, i32
  }
  func.func @transform_3(%arg0: i32, %arg1: i32) -> (i32, i32) {
    %c0_i32 = arith.constant 0 : i32
    return %arg0, %arg1 : i32, i32
  }
}

module attributes {stable_mosaic.version = 11 : i64} {
  func.func @_matmul_bias_kernel_single_k(%arg0: i32, %arg1: i32, %arg2: memref<64x128xf32, #tpu.memory_space<vmem>>, %arg3: memref<128x128xbf16, #tpu.memory_space<vmem>>, %arg4: memref<1x128xf32, #tpu.memory_space<vmem>>, %arg5: memref<64x128xf32, #tpu.memory_space<vmem>>) attributes {dimension_semantics = [#tpu.dimension_semantics<parallel>, #tpu.dimension_semantics<parallel>], iteration_bounds = array<i64: 1, 1>, scalar_prefetch = 0 : i64, scratch_operands = 0 : i64, tpu.core_type = #tpu.core_type<tc>, window_params = [{transform_indices = @transform_0, window_bounds = array<i64: 64, 128>}, {transform_indices = @transform_1, window_bounds = array<i64: 128, 128>}, {transform_indices = @transform_2, window_bounds = array<i64: 1, 128>}, {transform_indices = @transform_3, window_bounds = array<i64: 64, 128>}]} {
    %c0 = arith.constant 0 : index
    %c0_0 = arith.constant 0 : index
    %0 = vector.load %arg2[%c0, %c0_0] : memref<64x128xf32, #tpu.memory_space<vmem>>, vector<64x128xf32>
    %1 = arith.truncf %0 : vector<64x128xf32> to vector<64x128xbf16>
    %c0_1 = arith.constant 0 : index
    %c0_2 = arith.constant 0 : index
    %2 = vector.load %arg3[%c0_1, %c0_2] : memref<128x128xbf16, #tpu.memory_space<vmem>>, vector<128x128xbf16>
    %cst = arith.constant dense<0.000000e+00> : vector<64x128xf32>
    %3 = tpu.matmul %1, %2, %cst {dimension_numbers = #tpu.dot_dimension_numbers<[1], [0], [0], [1], [0, 0, 1, 1], [], []>} : vector<64x128xbf16>, vector<128x128xbf16>, vector<64x128xf32> -> vector<64x128xf32>
    %c0_3 = arith.constant 0 : index
    %c0_4 = arith.constant 0 : index
    %4 = vector.load %arg4[%c0_3, %c0_4] : memref<1x128xf32, #tpu.memory_space<vmem>>, vector<1x128xf32>
    %5 = vector.broadcast %4 : vector<1x128xf32> to vector<64x128xf32>
    %6 = arith.addf %3, %5 : vector<64x128xf32>
    %c0_5 = arith.constant 0 : index
    %c0_6 = arith.constant 0 : index
    %7 = vector.load %arg5[%c0_5, %c0_6] : memref<64x128xf32, #tpu.memory_space<vmem>>, vector<64x128xf32>
    tpu.vector_store %arg5[%c0_5, %c0_6], %6 {strides = array<i32>} : memref<64x128xf32, #tpu.memory_space<vmem>>, vector<64x128xf32>,
    return
  }
  func.func @transform_0(%arg0: i32, %arg1: i32) -> (i32, i32) {
    %c0_i32 = arith.constant 0 : i32
    %c0_i32_0 = arith.constant 0 : i32
    return %arg0, %c0_i32 : i32, i32
  }
  func.func @transform_1(%arg0: i32, %arg1: i32) -> (i32, i32) {
    %c0_i32 = arith.constant 0 : i32
    %c0_i32_0 = arith.constant 0 : i32
    return %c0_i32, %arg1 : i32, i32
  }
  func.func @transform_2(%arg0: i32, %arg1: i32) -> (i32, i32) {
    %c0_i32 = arith.constant 0 : i32
    %c0_i32_0 = arith.constant 0 : i32
    return %c0_i32, %arg1 : i32, i32
  }
  func.func @transform_3(%arg0: i32, %arg1: i32) -> (i32, i32) {
    %c0_i32 = arith.constant 0 : i32
    return %arg0, %arg1 : i32, i32
  }
}

module attributes {stable_mosaic.version = 11 : i64} {
  func.func @_lstm_recurrent_kernel(%arg0: i32, %arg1: i32, %arg2: memref<8x8x512xbf16, #tpu.memory_space<vmem>>, %arg3: memref<128x512xf32, #tpu.memory_space<any>>, %arg4: memref<8x8x128xf32, #tpu.memory_space<vmem>>, %arg5: memref<128x512xf32, #tpu.memory_space<vmem>>, %arg6: memref<8x128xf32, #tpu.memory_space<vmem>>, %arg7: memref<8x128xf32, #tpu.memory_space<vmem>>, %arg8: memref<!tpu.dma_semaphore, #tpu.memory_space<semaphore_mem>>) attributes {dimension_semantics = [#tpu.dimension_semantics<parallel>, #tpu.dimension_semantics<arbitrary>], iteration_bounds = array<i64: 1, 1>, scalar_prefetch = 0 : i64, scratch_operands = 4 : i64, tpu.core_type = #tpu.core_type<tc>, window_params = [{transform_indices = @transform_0, window_bounds = array<i64: 8, 8, 512>}, {}, {transform_indices = @transform_2, window_bounds = array<i64: 8, 8, 128>}]} {
    %c0_i32 = arith.constant 0 : i32
    %0 = arith.cmpi eq, %arg1, %c0_i32 : i32
    %1 = arith.extui %0 : i1 to i32
    %c0_i32_0 = arith.constant 0 : i32
    %2 = arith.cmpi ne, %1, %c0_i32_0 : i32
    scf.if %2 {
      tpu.enqueue_dma source(%arg3 : memref<128x512xf32, #tpu.memory_space<any>>) target(%arg5 : memref<128x512xf32, #tpu.memory_space<vmem>>) target_semaphore(%arg8 : memref<!tpu.dma_semaphore, #tpu.memory_space<semaphore_mem>>)
      tpu.wait_dma2 semaphore(%arg8 : memref<!tpu.dma_semaphore, #tpu.memory_space<semaphore_mem>>) src(%arg3 : memref<128x512xf32, #tpu.memory_space<any>>) dst(%arg5 : memref<128x512xf32, #tpu.memory_space<vmem>>)
      %cst_96 = arith.constant 0.000000e+00 : f32
      %279 = vector.broadcast %cst_96 : f32 to vector<8x128xf32>
      %c0_97 = arith.constant 0 : index
      %c0_98 = arith.constant 0 : index
      %280 = vector.load %arg6[%c0_97, %c0_98] : memref<8x128xf32, #tpu.memory_space<vmem>>, vector<8x128xf32>
      tpu.vector_store %arg6[%c0_97, %c0_98], %279 {strides = array<i32>} : memref<8x128xf32, #tpu.memory_space<vmem>>, vector<8x128xf32>,
      %cst_99 = arith.constant 0.000000e+00 : f32
      %281 = vector.broadcast %cst_99 : f32 to vector<8x128xf32>
      %c0_100 = arith.constant 0 : index
      %c0_101 = arith.constant 0 : index
      %282 = vector.load %arg7[%c0_100, %c0_101] : memref<8x128xf32, #tpu.memory_space<vmem>>, vector<8x128xf32>
      tpu.vector_store %arg7[%c0_100, %c0_101], %281 {strides = array<i32>} : memref<8x128xf32, #tpu.memory_space<vmem>>, vector<8x128xf32>,
    } else {
    }
    %c0 = arith.constant 0 : index
    %c0_1 = arith.constant 0 : index
    %3 = vector.load %arg6[%c0, %c0_1] : memref<8x128xf32, #tpu.memory_space<vmem>>, vector<8x128xf32>
    %c0_2 = arith.constant 0 : index
    %c0_3 = arith.constant 0 : index
    %4 = vector.load %arg7[%c0_2, %c0_3] : memref<8x128xf32, #tpu.memory_space<vmem>>, vector<8x128xf32>
    %c0_4 = arith.constant 0 : index
    %c0_5 = arith.constant 0 : index
    %c0_6 = arith.constant 0 : index
    %5 = vector.load %arg2[%c0_4, %c0_5, %c0_6] : memref<8x8x512xbf16, #tpu.memory_space<vmem>>, vector<1x8x512xbf16>
    %6 = vector.shape_cast %5 : vector<1x8x512xbf16> to vector<8x512xbf16>
    %7 = arith.extf %6 : vector<8x512xbf16> to vector<8x512xf32>
    %c0_7 = arith.constant 0 : index
    %c0_8 = arith.constant 0 : index
    %8 = vector.load %arg5[%c0_7, %c0_8] : memref<128x512xf32, #tpu.memory_space<vmem>>, vector<128x512xf32>
    %cst = arith.constant dense<0.000000e+00> : vector<8x512xf32>
    %9 = tpu.matmul %3, %8, %cst {dimension_numbers = #tpu.dot_dimension_numbers<[1], [0], [0], [1], [0, 0, 1, 1], [], []>} : vector<8x128xf32>, vector<128x512xf32>, vector<8x512xf32> -> vector<8x512xf32>
    %10 = arith.addf %7, %9 : vector<8x512xf32>
    %11 = vector.extract_strided_slice %10 {offsets = [0, 0], sizes = [8, 128], strides = [1, 1]} : vector<8x512xf32> to vector<8x128xf32>
    %12 = arith.negf %11 : vector<8x128xf32>
    %13 = math.exp %12 : vector<8x128xf32>
    %cst_9 = arith.constant 1.000000e+00 : f32
    %14 = vector.broadcast %cst_9 : f32 to vector<8x128xf32>
    %15 = arith.addf %14, %13 : vector<8x128xf32>
    %16 = arith.divf %14, %15 : vector<8x128xf32>
    %17 = vector.extract_strided_slice %10 {offsets = [0, 128], sizes = [8, 128], strides = [1, 1]} : vector<8x512xf32> to vector<8x128xf32>
    %18 = arith.negf %17 : vector<8x128xf32>
    %19 = math.exp %18 : vector<8x128xf32>
    %cst_10 = arith.constant 1.000000e+00 : f32
    %20 = vector.broadcast %cst_10 : f32 to vector<8x128xf32>
    %21 = arith.addf %20, %19 : vector<8x128xf32>
    %22 = arith.divf %20, %21 : vector<8x128xf32>
    %23 = vector.extract_strided_slice %10 {offsets = [0, 256], sizes = [8, 128], strides = [1, 1]} : vector<8x512xf32> to vector<8x128xf32>
    %24 = math.tanh %23 : vector<8x128xf32>
    %25 = vector.extract_strided_slice %10 {offsets = [0, 384], sizes = [8, 128], strides = [1, 1]} : vector<8x512xf32> to vector<8x128xf32>
    %26 = arith.negf %25 : vector<8x128xf32>
    %27 = math.exp %26 : vector<8x128xf32>
    %cst_11 = arith.constant 1.000000e+00 : f32
    %28 = vector.broadcast %cst_11 : f32 to vector<8x128xf32>
    %29 = arith.addf %28, %27 : vector<8x128xf32>
    %30 = arith.divf %28, %29 : vector<8x128xf32>
    %31 = arith.mulf %22, %4 : vector<8x128xf32>
    %32 = arith.mulf %16, %24 : vector<8x128xf32>
    %33 = arith.addf %31, %32 : vector<8x128xf32>
    %34 = math.tanh %33 : vector<8x128xf32>
    %35 = arith.mulf %30, %34 : vector<8x128xf32>
    %c0_12 = arith.constant 0 : index
    %c0_13 = arith.constant 0 : index
    %c0_14 = arith.constant 0 : index
    %36 = vector.load %arg4[%c0_12, %c0_13, %c0_14] : memref<8x8x128xf32, #tpu.memory_space<vmem>>, vector<8x1x128xf32>
    %37 = vector.shape_cast %36 : vector<8x1x128xf32> to vector<8x128xf32>
    %38 = vector.shape_cast %35 : vector<8x128xf32> to vector<8x1x128xf32>
    tpu.vector_store %arg4[%c0_12, %c0_13, %c0_14], %38 {strides = array<i32>} : memref<8x8x128xf32, #tpu.memory_space<vmem>>, vector<8x1x128xf32>,
    %c1 = arith.constant 1 : index
    %c0_15 = arith.constant 0 : index
    %c0_16 = arith.constant 0 : index
    %39 = vector.load %arg2[%c1, %c0_15, %c0_16] : memref<8x8x512xbf16, #tpu.memory_space<vmem>>, vector<1x8x512xbf16>
    %40 = vector.shape_cast %39 : vector<1x8x512xbf16> to vector<8x512xbf16>
    %41 = arith.extf %40 : vector<8x512xbf16> to vector<8x512xf32>
    %c0_17 = arith.constant 0 : index
    %c0_18 = arith.constant 0 : index
    %42 = vector.load %arg5[%c0_17, %c0_18] : memref<128x512xf32, #tpu.memory_space<vmem>>, vector<128x512xf32>
    %cst_19 = arith.constant dense<0.000000e+00> : vector<8x512xf32>
    %43 = tpu.matmul %35, %42, %cst_19 {dimension_numbers = #tpu.dot_dimension_numbers<[1], [0], [0], [1], [0, 0, 1, 1], [], []>} : vector<8x128xf32>, vector<128x512xf32>, vector<8x512xf32> -> vector<8x512xf32>
    %44 = arith.addf %41, %43 : vector<8x512xf32>
    %45 = vector.extract_strided_slice %44 {offsets = [0, 0], sizes = [8, 128], strides = [1, 1]} : vector<8x512xf32> to vector<8x128xf32>
    %46 = arith.negf %45 : vector<8x128xf32>
    %47 = math.exp %46 : vector<8x128xf32>
    %cst_20 = arith.constant 1.000000e+00 : f32
    %48 = vector.broadcast %cst_20 : f32 to vector<8x128xf32>
    %49 = arith.addf %48, %47 : vector<8x128xf32>
    %50 = arith.divf %48, %49 : vector<8x128xf32>
    %51 = vector.extract_strided_slice %44 {offsets = [0, 128], sizes = [8, 128], strides = [1, 1]} : vector<8x512xf32> to vector<8x128xf32>
    %52 = arith.negf %51 : vector<8x128xf32>
    %53 = math.exp %52 : vector<8x128xf32>
    %cst_21 = arith.constant 1.000000e+00 : f32
    %54 = vector.broadcast %cst_21 : f32 to vector<8x128xf32>
    %55 = arith.addf %54, %53 : vector<8x128xf32>
    %56 = arith.divf %54, %55 : vector<8x128xf32>
    %57 = vector.extract_strided_slice %44 {offsets = [0, 256], sizes = [8, 128], strides = [1, 1]} : vector<8x512xf32> to vector<8x128xf32>
    %58 = math.tanh %57 : vector<8x128xf32>
    %59 = vector.extract_strided_slice %44 {offsets = [0, 384], sizes = [8, 128], strides = [1, 1]} : vector<8x512xf32> to vector<8x128xf32>
    %60 = arith.negf %59 : vector<8x128xf32>
    %61 = math.exp %60 : vector<8x128xf32>
    %cst_22 = arith.constant 1.000000e+00 : f32
    %62 = vector.broadcast %cst_22 : f32 to vector<8x128xf32>
    %63 = arith.addf %62, %61 : vector<8x128xf32>
    %64 = arith.divf %62, %63 : vector<8x128xf32>
    %65 = arith.mulf %56, %33 : vector<8x128xf32>
    %66 = arith.mulf %50, %58 : vector<8x128xf32>
    %67 = arith.addf %65, %66 : vector<8x128xf32>
    %68 = math.tanh %67 : vector<8x128xf32>
    %69 = arith.mulf %64, %68 : vector<8x128xf32>
    %c0_23 = arith.constant 0 : index
    %c1_24 = arith.constant 1 : index
    %c0_25 = arith.constant 0 : index
    %70 = vector.load %arg4[%c0_23, %c1_24, %c0_25] : memref<8x8x128xf32, #tpu.memory_space<vmem>>, vector<8x1x128xf32>
    %71 = vector.shape_cast %70 : vector<8x1x128xf32> to vector<8x128xf32>
    %72 = vector.shape_cast %69 : vector<8x128xf32> to vector<8x1x128xf32>
    tpu.vector_store %arg4[%c0_23, %c1_24, %c0_25], %72 {strides = array<i32>} : memref<8x8x128xf32, #tpu.memory_space<vmem>>, vector<8x1x128xf32>,
    %c2 = arith.constant 2 : index
    %c0_26 = arith.constant 0 : index
    %c0_27 = arith.constant 0 : index
    %73 = vector.load %arg2[%c2, %c0_26, %c0_27] : memref<8x8x512xbf16, #tpu.memory_space<vmem>>, vector<1x8x512xbf16>
    %74 = vector.shape_cast %73 : vector<1x8x512xbf16> to vector<8x512xbf16>
    %75 = arith.extf %74 : vector<8x512xbf16> to vector<8x512xf32>
    %c0_28 = arith.constant 0 : index
    %c0_29 = arith.constant 0 : index
    %76 = vector.load %arg5[%c0_28, %c0_29] : memref<128x512xf32, #tpu.memory_space<vmem>>, vector<128x512xf32>
    %cst_30 = arith.constant dense<0.000000e+00> : vector<8x512xf32>
    %77 = tpu.matmul %69, %76, %cst_30 {dimension_numbers = #tpu.dot_dimension_numbers<[1], [0], [0], [1], [0, 0, 1, 1], [], []>} : vector<8x128xf32>, vector<128x512xf32>, vector<8x512xf32> -> vector<8x512xf32>
    %78 = arith.addf %75, %77 : vector<8x512xf32>
    %79 = vector.extract_strided_slice %78 {offsets = [0, 0], sizes = [8, 128], strides = [1, 1]} : vector<8x512xf32> to vector<8x128xf32>
    %80 = arith.negf %79 : vector<8x128xf32>
    %81 = math.exp %80 : vector<8x128xf32>
    %cst_31 = arith.constant 1.000000e+00 : f32
    %82 = vector.broadcast %cst_31 : f32 to vector<8x128xf32>
    %83 = arith.addf %82, %81 : vector<8x128xf32>
    %84 = arith.divf %82, %83 : vector<8x128xf32>
    %85 = vector.extract_strided_slice %78 {offsets = [0, 128], sizes = [8, 128], strides = [1, 1]} : vector<8x512xf32> to vector<8x128xf32>
    %86 = arith.negf %85 : vector<8x128xf32>
    %87 = math.exp %86 : vector<8x128xf32>
    %cst_32 = arith.constant 1.000000e+00 : f32
    %88 = vector.broadcast %cst_32 : f32 to vector<8x128xf32>
    %89 = arith.addf %88, %87 : vector<8x128xf32>
    %90 = arith.divf %88, %89 : vector<8x128xf32>
    %91 = vector.extract_strided_slice %78 {offsets = [0, 256], sizes = [8, 128], strides = [1, 1]} : vector<8x512xf32> to vector<8x128xf32>
    %92 = math.tanh %91 : vector<8x128xf32>
    %93 = vector.extract_strided_slice %78 {offsets = [0, 384], sizes = [8, 128], strides = [1, 1]} : vector<8x512xf32> to vector<8x128xf32>
    %94 = arith.negf %93 : vector<8x128xf32>
    %95 = math.exp %94 : vector<8x128xf32>
    %cst_33 = arith.constant 1.000000e+00 : f32
    %96 = vector.broadcast %cst_33 : f32 to vector<8x128xf32>
    %97 = arith.addf %96, %95 : vector<8x128xf32>
    %98 = arith.divf %96, %97 : vector<8x128xf32>
    %99 = arith.mulf %90, %67 : vector<8x128xf32>
    %100 = arith.mulf %84, %92 : vector<8x128xf32>
    %101 = arith.addf %99, %100 : vector<8x128xf32>
    %102 = math.tanh %101 : vector<8x128xf32>
    %103 = arith.mulf %98, %102 : vector<8x128xf32>
    %c0_34 = arith.constant 0 : index
    %c2_35 = arith.constant 2 : index
    %c0_36 = arith.constant 0 : index
    %104 = vector.load %arg4[%c0_34, %c2_35, %c0_36] : memref<8x8x128xf32, #tpu.memory_space<vmem>>, vector<8x1x128xf32>
    %105 = vector.shape_cast %104 : vector<8x1x128xf32> to vector<8x128xf32>
    %106 = vector.shape_cast %103 : vector<8x128xf32> to vector<8x1x128xf32>
    tpu.vector_store %arg4[%c0_34, %c2_35, %c0_36], %106 {strides = array<i32>} : memref<8x8x128xf32, #tpu.memory_space<vmem>>, vector<8x1x128xf32>,
    %c3 = arith.constant 3 : index
    %c0_37 = arith.constant 0 : index
    %c0_38 = arith.constant 0 : index
    %107 = vector.load %arg2[%c3, %c0_37, %c0_38] : memref<8x8x512xbf16, #tpu.memory_space<vmem>>, vector<1x8x512xbf16>
    %108 = vector.shape_cast %107 : vector<1x8x512xbf16> to vector<8x512xbf16>
    %109 = arith.extf %108 : vector<8x512xbf16> to vector<8x512xf32>
    %c0_39 = arith.constant 0 : index
    %c0_40 = arith.constant 0 : index
    %110 = vector.load %arg5[%c0_39, %c0_40] : memref<128x512xf32, #tpu.memory_space<vmem>>, vector<128x512xf32>
    %cst_41 = arith.constant dense<0.000000e+00> : vector<8x512xf32>
    %111 = tpu.matmul %103, %110, %cst_41 {dimension_numbers = #tpu.dot_dimension_numbers<[1], [0], [0], [1], [0, 0, 1, 1], [], []>} : vector<8x128xf32>, vector<128x512xf32>, vector<8x512xf32> -> vector<8x512xf32>
    %112 = arith.addf %109, %111 : vector<8x512xf32>
    %113 = vector.extract_strided_slice %112 {offsets = [0, 0], sizes = [8, 128], strides = [1, 1]} : vector<8x512xf32> to vector<8x128xf32>
    %114 = arith.negf %113 : vector<8x128xf32>
    %115 = math.exp %114 : vector<8x128xf32>
    %cst_42 = arith.constant 1.000000e+00 : f32
    %116 = vector.broadcast %cst_42 : f32 to vector<8x128xf32>
    %117 = arith.addf %116, %115 : vector<8x128xf32>
    %118 = arith.divf %116, %117 : vector<8x128xf32>
    %119 = vector.extract_strided_slice %112 {offsets = [0, 128], sizes = [8, 128], strides = [1, 1]} : vector<8x512xf32> to vector<8x128xf32>
    %120 = arith.negf %119 : vector<8x128xf32>
    %121 = math.exp %120 : vector<8x128xf32>
    %cst_43 = arith.constant 1.000000e+00 : f32
    %122 = vector.broadcast %cst_43 : f32 to vector<8x128xf32>
    %123 = arith.addf %122, %121 : vector<8x128xf32>
    %124 = arith.divf %122, %123 : vector<8x128xf32>
    %125 = vector.extract_strided_slice %112 {offsets = [0, 256], sizes = [8, 128], strides = [1, 1]} : vector<8x512xf32> to vector<8x128xf32>
    %126 = math.tanh %125 : vector<8x128xf32>
    %127 = vector.extract_strided_slice %112 {offsets = [0, 384], sizes = [8, 128], strides = [1, 1]} : vector<8x512xf32> to vector<8x128xf32>
    %128 = arith.negf %127 : vector<8x128xf32>
    %129 = math.exp %128 : vector<8x128xf32>
    %cst_44 = arith.constant 1.000000e+00 : f32
    %130 = vector.broadcast %cst_44 : f32 to vector<8x128xf32>
    %131 = arith.addf %130, %129 : vector<8x128xf32>
    %132 = arith.divf %130, %131 : vector<8x128xf32>
    %133 = arith.mulf %124, %101 : vector<8x128xf32>
    %134 = arith.mulf %118, %126 : vector<8x128xf32>
    %135 = arith.addf %133, %134 : vector<8x128xf32>
    %136 = math.tanh %135 : vector<8x128xf32>
    %137 = arith.mulf %132, %136 : vector<8x128xf32>
    %c0_45 = arith.constant 0 : index
    %c3_46 = arith.constant 3 : index
    %c0_47 = arith.constant 0 : index
    %138 = vector.load %arg4[%c0_45, %c3_46, %c0_47] : memref<8x8x128xf32, #tpu.memory_space<vmem>>, vector<8x1x128xf32>
    %139 = vector.shape_cast %138 : vector<8x1x128xf32> to vector<8x128xf32>
    %140 = vector.shape_cast %137 : vector<8x128xf32> to vector<8x1x128xf32>
    tpu.vector_store %arg4[%c0_45, %c3_46, %c0_47], %140 {strides = array<i32>} : memref<8x8x128xf32, #tpu.memory_space<vmem>>, vector<8x1x128xf32>,
    %c4 = arith.constant 4 : index
    %c0_48 = arith.constant 0 : index
    %c0_49 = arith.constant 0 : index
    %141 = vector.load %arg2[%c4, %c0_48, %c0_49] : memref<8x8x512xbf16, #tpu.memory_space<vmem>>, vector<1x8x512xbf16>
    %142 = vector.shape_cast %141 : vector<1x8x512xbf16> to vector<8x512xbf16>
    %143 = arith.extf %142 : vector<8x512xbf16> to vector<8x512xf32>
    %c0_50 = arith.constant 0 : index
    %c0_51 = arith.constant 0 : index
    %144 = vector.load %arg5[%c0_50, %c0_51] : memref<128x512xf32, #tpu.memory_space<vmem>>, vector<128x512xf32>
    %cst_52 = arith.constant dense<0.000000e+00> : vector<8x512xf32>
    %145 = tpu.matmul %137, %144, %cst_52 {dimension_numbers = #tpu.dot_dimension_numbers<[1], [0], [0], [1], [0, 0, 1, 1], [], []>} : vector<8x128xf32>, vector<128x512xf32>, vector<8x512xf32> -> vector<8x512xf32>
    %146 = arith.addf %143, %145 : vector<8x512xf32>
    %147 = vector.extract_strided_slice %146 {offsets = [0, 0], sizes = [8, 128], strides = [1, 1]} : vector<8x512xf32> to vector<8x128xf32>
    %148 = arith.negf %147 : vector<8x128xf32>
    %149 = math.exp %148 : vector<8x128xf32>
    %cst_53 = arith.constant 1.000000e+00 : f32
    %150 = vector.broadcast %cst_53 : f32 to vector<8x128xf32>
    %151 = arith.addf %150, %149 : vector<8x128xf32>
    %152 = arith.divf %150, %151 : vector<8x128xf32>
    %153 = vector.extract_strided_slice %146 {offsets = [0, 128], sizes = [8, 128], strides = [1, 1]} : vector<8x512xf32> to vector<8x128xf32>
    %154 = arith.negf %153 : vector<8x128xf32>
    %155 = math.exp %154 : vector<8x128xf32>
    %cst_54 = arith.constant 1.000000e+00 : f32
    %156 = vector.broadcast %cst_54 : f32 to vector<8x128xf32>
    %157 = arith.addf %156, %155 : vector<8x128xf32>
    %158 = arith.divf %156, %157 : vector<8x128xf32>
    %159 = vector.extract_strided_slice %146 {offsets = [0, 256], sizes = [8, 128], strides = [1, 1]} : vector<8x512xf32> to vector<8x128xf32>
    %160 = math.tanh %159 : vector<8x128xf32>
    %161 = vector.extract_strided_slice %146 {offsets = [0, 384], sizes = [8, 128], strides = [1, 1]} : vector<8x512xf32> to vector<8x128xf32>
    %162 = arith.negf %161 : vector<8x128xf32>
    %163 = math.exp %162 : vector<8x128xf32>
    %cst_55 = arith.constant 1.000000e+00 : f32
    %164 = vector.broadcast %cst_55 : f32 to vector<8x128xf32>
    %165 = arith.addf %164, %163 : vector<8x128xf32>
    %166 = arith.divf %164, %165 : vector<8x128xf32>
    %167 = arith.mulf %158, %135 : vector<8x128xf32>
    %168 = arith.mulf %152, %160 : vector<8x128xf32>
    %169 = arith.addf %167, %168 : vector<8x128xf32>
    %170 = math.tanh %169 : vector<8x128xf32>
    %171 = arith.mulf %166, %170 : vector<8x128xf32>
    %c0_56 = arith.constant 0 : index
    %c4_57 = arith.constant 4 : index
    %c0_58 = arith.constant 0 : index
    %172 = vector.load %arg4[%c0_56, %c4_57, %c0_58] : memref<8x8x128xf32, #tpu.memory_space<vmem>>, vector<8x1x128xf32>
    %173 = vector.shape_cast %172 : vector<8x1x128xf32> to vector<8x128xf32>
    %174 = vector.shape_cast %171 : vector<8x128xf32> to vector<8x1x128xf32>
    tpu.vector_store %arg4[%c0_56, %c4_57, %c0_58], %174 {strides = array<i32>} : memref<8x8x128xf32, #tpu.memory_space<vmem>>, vector<8x1x128xf32>,
    %c5 = arith.constant 5 : index
    %c0_59 = arith.constant 0 : index
    %c0_60 = arith.constant 0 : index
    %175 = vector.load %arg2[%c5, %c0_59, %c0_60] : memref<8x8x512xbf16, #tpu.memory_space<vmem>>, vector<1x8x512xbf16>
    %176 = vector.shape_cast %175 : vector<1x8x512xbf16> to vector<8x512xbf16>
    %177 = arith.extf %176 : vector<8x512xbf16> to vector<8x512xf32>
    %c0_61 = arith.constant 0 : index
    %c0_62 = arith.constant 0 : index
    %178 = vector.load %arg5[%c0_61, %c0_62] : memref<128x512xf32, #tpu.memory_space<vmem>>, vector<128x512xf32>
    %cst_63 = arith.constant dense<0.000000e+00> : vector<8x512xf32>
    %179 = tpu.matmul %171, %178, %cst_63 {dimension_numbers = #tpu.dot_dimension_numbers<[1], [0], [0], [1], [0, 0, 1, 1], [], []>} : vector<8x128xf32>, vector<128x512xf32>, vector<8x512xf32> -> vector<8x512xf32>
    %180 = arith.addf %177, %179 : vector<8x512xf32>
    %181 = vector.extract_strided_slice %180 {offsets = [0, 0], sizes = [8, 128], strides = [1, 1]} : vector<8x512xf32> to vector<8x128xf32>
    %182 = arith.negf %181 : vector<8x128xf32>
    %183 = math.exp %182 : vector<8x128xf32>
    %cst_64 = arith.constant 1.000000e+00 : f32
    %184 = vector.broadcast %cst_64 : f32 to vector<8x128xf32>
    %185 = arith.addf %184, %183 : vector<8x128xf32>
    %186 = arith.divf %184, %185 : vector<8x128xf32>
    %187 = vector.extract_strided_slice %180 {offsets = [0, 128], sizes = [8, 128], strides = [1, 1]} : vector<8x512xf32> to vector<8x128xf32>
    %188 = arith.negf %187 : vector<8x128xf32>
    %189 = math.exp %188 : vector<8x128xf32>
    %cst_65 = arith.constant 1.000000e+00 : f32
    %190 = vector.broadcast %cst_65 : f32 to vector<8x128xf32>
    %191 = arith.addf %190, %189 : vector<8x128xf32>
    %192 = arith.divf %190, %191 : vector<8x128xf32>
    %193 = vector.extract_strided_slice %180 {offsets = [0, 256], sizes = [8, 128], strides = [1, 1]} : vector<8x512xf32> to vector<8x128xf32>
    %194 = math.tanh %193 : vector<8x128xf32>
    %195 = vector.extract_strided_slice %180 {offsets = [0, 384], sizes = [8, 128], strides = [1, 1]} : vector<8x512xf32> to vector<8x128xf32>
    %196 = arith.negf %195 : vector<8x128xf32>
    %197 = math.exp %196 : vector<8x128xf32>
    %cst_66 = arith.constant 1.000000e+00 : f32
    %198 = vector.broadcast %cst_66 : f32 to vector<8x128xf32>
    %199 = arith.addf %198, %197 : vector<8x128xf32>
    %200 = arith.divf %198, %199 : vector<8x128xf32>
    %201 = arith.mulf %192, %169 : vector<8x128xf32>
    %202 = arith.mulf %186, %194 : vector<8x128xf32>
    %203 = arith.addf %201, %202 : vector<8x128xf32>
    %204 = math.tanh %203 : vector<8x128xf32>
    %205 = arith.mulf %200, %204 : vector<8x128xf32>
    %c0_67 = arith.constant 0 : index
    %c5_68 = arith.constant 5 : index
    %c0_69 = arith.constant 0 : index
    %206 = vector.load %arg4[%c0_67, %c5_68, %c0_69] : memref<8x8x128xf32, #tpu.memory_space<vmem>>, vector<8x1x128xf32>
    %207 = vector.shape_cast %206 : vector<8x1x128xf32> to vector<8x128xf32>
    %208 = vector.shape_cast %205 : vector<8x128xf32> to vector<8x1x128xf32>
    tpu.vector_store %arg4[%c0_67, %c5_68, %c0_69], %208 {strides = array<i32>} : memref<8x8x128xf32, #tpu.memory_space<vmem>>, vector<8x1x128xf32>,
    %c6 = arith.constant 6 : index
    %c0_70 = arith.constant 0 : index
    %c0_71 = arith.constant 0 : index
    %209 = vector.load %arg2[%c6, %c0_70, %c0_71] : memref<8x8x512xbf16, #tpu.memory_space<vmem>>, vector<1x8x512xbf16>
    %210 = vector.shape_cast %209 : vector<1x8x512xbf16> to vector<8x512xbf16>
    %211 = arith.extf %210 : vector<8x512xbf16> to vector<8x512xf32>
    %c0_72 = arith.constant 0 : index
    %c0_73 = arith.constant 0 : index
    %212 = vector.load %arg5[%c0_72, %c0_73] : memref<128x512xf32, #tpu.memory_space<vmem>>, vector<128x512xf32>
    %cst_74 = arith.constant dense<0.000000e+00> : vector<8x512xf32>
    %213 = tpu.matmul %205, %212, %cst_74 {dimension_numbers = #tpu.dot_dimension_numbers<[1], [0], [0], [1], [0, 0, 1, 1], [], []>} : vector<8x128xf32>, vector<128x512xf32>, vector<8x512xf32> -> vector<8x512xf32>
    %214 = arith.addf %211, %213 : vector<8x512xf32>
    %215 = vector.extract_strided_slice %214 {offsets = [0, 0], sizes = [8, 128], strides = [1, 1]} : vector<8x512xf32> to vector<8x128xf32>
    %216 = arith.negf %215 : vector<8x128xf32>
    %217 = math.exp %216 : vector<8x128xf32>
    %cst_75 = arith.constant 1.000000e+00 : f32
    %218 = vector.broadcast %cst_75 : f32 to vector<8x128xf32>
    %219 = arith.addf %218, %217 : vector<8x128xf32>
    %220 = arith.divf %218, %219 : vector<8x128xf32>
    %221 = vector.extract_strided_slice %214 {offsets = [0, 128], sizes = [8, 128], strides = [1, 1]} : vector<8x512xf32> to vector<8x128xf32>
    %222 = arith.negf %221 : vector<8x128xf32>
    %223 = math.exp %222 : vector<8x128xf32>
    %cst_76 = arith.constant 1.000000e+00 : f32
    %224 = vector.broadcast %cst_76 : f32 to vector<8x128xf32>
    %225 = arith.addf %224, %223 : vector<8x128xf32>
    %226 = arith.divf %224, %225 : vector<8x128xf32>
    %227 = vector.extract_strided_slice %214 {offsets = [0, 256], sizes = [8, 128], strides = [1, 1]} : vector<8x512xf32> to vector<8x128xf32>
    %228 = math.tanh %227 : vector<8x128xf32>
    %229 = vector.extract_strided_slice %214 {offsets = [0, 384], sizes = [8, 128], strides = [1, 1]} : vector<8x512xf32> to vector<8x128xf32>
    %230 = arith.negf %229 : vector<8x128xf32>
    %231 = math.exp %230 : vector<8x128xf32>
    %cst_77 = arith.constant 1.000000e+00 : f32
    %232 = vector.broadcast %cst_77 : f32 to vector<8x128xf32>
    %233 = arith.addf %232, %231 : vector<8x128xf32>
    %234 = arith.divf %232, %233 : vector<8x128xf32>
    %235 = arith.mulf %226, %203 : vector<8x128xf32>
    %236 = arith.mulf %220, %228 : vector<8x128xf32>
    %237 = arith.addf %235, %236 : vector<8x128xf32>
    %238 = math.tanh %237 : vector<8x128xf32>
    %239 = arith.mulf %234, %238 : vector<8x128xf32>
    %c0_78 = arith.constant 0 : index
    %c6_79 = arith.constant 6 : index
    %c0_80 = arith.constant 0 : index
    %240 = vector.load %arg4[%c0_78, %c6_79, %c0_80] : memref<8x8x128xf32, #tpu.memory_space<vmem>>, vector<8x1x128xf32>
    %241 = vector.shape_cast %240 : vector<8x1x128xf32> to vector<8x128xf32>
    %242 = vector.shape_cast %239 : vector<8x128xf32> to vector<8x1x128xf32>
    tpu.vector_store %arg4[%c0_78, %c6_79, %c0_80], %242 {strides = array<i32>} : memref<8x8x128xf32, #tpu.memory_space<vmem>>, vector<8x1x128xf32>,
    %c7 = arith.constant 7 : index
    %c0_81 = arith.constant 0 : index
    %c0_82 = arith.constant 0 : index
    %243 = vector.load %arg2[%c7, %c0_81, %c0_82] : memref<8x8x512xbf16, #tpu.memory_space<vmem>>, vector<1x8x512xbf16>
    %244 = vector.shape_cast %243 : vector<1x8x512xbf16> to vector<8x512xbf16>
    %245 = arith.extf %244 : vector<8x512xbf16> to vector<8x512xf32>
    %c0_83 = arith.constant 0 : index
    %c0_84 = arith.constant 0 : index
    %246 = vector.load %arg5[%c0_83, %c0_84] : memref<128x512xf32, #tpu.memory_space<vmem>>, vector<128x512xf32>
    %cst_85 = arith.constant dense<0.000000e+00> : vector<8x512xf32>
    %247 = tpu.matmul %239, %246, %cst_85 {dimension_numbers = #tpu.dot_dimension_numbers<[1], [0], [0], [1], [0, 0, 1, 1], [], []>} : vector<8x128xf32>, vector<128x512xf32>, vector<8x512xf32> -> vector<8x512xf32>
    %248 = arith.addf %245, %247 : vector<8x512xf32>
    %249 = vector.extract_strided_slice %248 {offsets = [0, 0], sizes = [8, 128], strides = [1, 1]} : vector<8x512xf32> to vector<8x128xf32>
    %250 = arith.negf %249 : vector<8x128xf32>
    %251 = math.exp %250 : vector<8x128xf32>
    %cst_86 = arith.constant 1.000000e+00 : f32
    %252 = vector.broadcast %cst_86 : f32 to vector<8x128xf32>
    %253 = arith.addf %252, %251 : vector<8x128xf32>
    %254 = arith.divf %252, %253 : vector<8x128xf32>
    %255 = vector.extract_strided_slice %248 {offsets = [0, 128], sizes = [8, 128], strides = [1, 1]} : vector<8x512xf32> to vector<8x128xf32>
    %256 = arith.negf %255 : vector<8x128xf32>
    %257 = math.exp %256 : vector<8x128xf32>
    %cst_87 = arith.constant 1.000000e+00 : f32
    %258 = vector.broadcast %cst_87 : f32 to vector<8x128xf32>
    %259 = arith.addf %258, %257 : vector<8x128xf32>
    %260 = arith.divf %258, %259 : vector<8x128xf32>
    %261 = vector.extract_strided_slice %248 {offsets = [0, 256], sizes = [8, 128], strides = [1, 1]} : vector<8x512xf32> to vector<8x128xf32>
    %262 = math.tanh %261 : vector<8x128xf32>
    %263 = vector.extract_strided_slice %248 {offsets = [0, 384], sizes = [8, 128], strides = [1, 1]} : vector<8x512xf32> to vector<8x128xf32>
    %264 = arith.negf %263 : vector<8x128xf32>
    %265 = math.exp %264 : vector<8x128xf32>
    %cst_88 = arith.constant 1.000000e+00 : f32
    %266 = vector.broadcast %cst_88 : f32 to vector<8x128xf32>
    %267 = arith.addf %266, %265 : vector<8x128xf32>
    %268 = arith.divf %266, %267 : vector<8x128xf32>
    %269 = arith.mulf %260, %237 : vector<8x128xf32>
    %270 = arith.mulf %254, %262 : vector<8x128xf32>
    %271 = arith.addf %269, %270 : vector<8x128xf32>
    %272 = math.tanh %271 : vector<8x128xf32>
    %273 = arith.mulf %268, %272 : vector<8x128xf32>
    %c0_89 = arith.constant 0 : index
    %c7_90 = arith.constant 7 : index
    %c0_91 = arith.constant 0 : index
    %274 = vector.load %arg4[%c0_89, %c7_90, %c0_91] : memref<8x8x128xf32, #tpu.memory_space<vmem>>, vector<8x1x128xf32>
    %275 = vector.shape_cast %274 : vector<8x1x128xf32> to vector<8x128xf32>
    %276 = vector.shape_cast %273 : vector<8x128xf32> to vector<8x1x128xf32>
    tpu.vector_store %arg4[%c0_89, %c7_90, %c0_91], %276 {strides = array<i32>} : memref<8x8x128xf32, #tpu.memory_space<vmem>>, vector<8x1x128xf32>,
    %c0_92 = arith.constant 0 : index
    %c0_93 = arith.constant 0 : index
    %277 = vector.load %arg6[%c0_92, %c0_93] : memref<8x128xf32, #tpu.memory_space<vmem>>, vector<8x128xf32>
    tpu.vector_store %arg6[%c0_92, %c0_93], %273 {strides = array<i32>} : memref<8x128xf32, #tpu.memory_space<vmem>>, vector<8x128xf32>,
    %c0_94 = arith.constant 0 : index
    %c0_95 = arith.constant 0 : index
    %278 = vector.load %arg7[%c0_94, %c0_95] : memref<8x128xf32, #tpu.memory_space<vmem>>, vector<8x128xf32>
    tpu.vector_store %arg7[%c0_94, %c0_95], %271 {strides = array<i32>} : memref<8x128xf32, #tpu.memory_space<vmem>>, vector<8x128xf32>,
    return
  }
  func.func @transform_0(%arg0: i32, %arg1: i32) -> (i32, i32, i32) {
    %c0_i32 = arith.constant 0 : i32
    %c0_i32_0 = arith.constant 0 : i32
    return %arg1, %arg0, %c0_i32 : i32, i32, i32
  }
  func.func @transform_2(%arg0: i32, %arg1: i32) -> (i32, i32, i32) {
    %c0_i32 = arith.constant 0 : i32
    %c0_i32_0 = arith.constant 0 : i32
    return %arg0, %arg1, %c0_i32 : i32, i32, i32
  }
}

</mosaic_0001>

<bundles_post_ra>
// kernel: decoder_rnn_forward.5
= control target key start
LH: loop header
LB: loop body
LE: loop exit
PB: predicated region body
PF: predicated region fallthrough
CT: control target
= control target key end

     0   :  { %s370_s0 = inlined_call_operand.vmem [shape: f32[64,128], index: 0, kind: input, shape index: {}]   ;;  %s371_s1 = inlined_call_operand.vmem [shape: bf16[128,128], index: 1, kind: input, shape index: {}]   ;;  %s372_s2 = inlined_call_operand.vmem [shape: f32[1,128], index: 2, kind: input, shape index: {}]   ;;  %s373_s3 = inlined_call_operand.hbm [shape: f32[64,128], index: 3, kind: output, shape index: {}]  }
   0x1   :  { %v252_v0 = vld [vmem:[%s371_s1] sm:$0xff]   ;;  %v253_v1 = vld [vmem:[%s371_s1 + $0x8] sm:$0xff]   ;;  %v254_v2 = vld [vmem:[%s371_s1 + $0x10] sm:$0xff]  }
   0x2   :  { %209 = vmatprep.subr.bf16.mxu0 %v252_v0  ;;  %233 = vmatprep.subr.bf16.mxu1 %v252_v0  ;;  %v255_v3 = vld [vmem:[%s371_s1 + $0x18] sm:$0xff]   ;;  %v16_v4 = vld [vmem:[%s370_s0] sm:$0xff]  ;;  %v17_v5 = vld [vmem:[%s370_s0 + $0x8] sm:$0xff] }
   0x3   :  { %210 = vmatpush3.bf16.msra.mxu0 %v252_v0  ;;  %241 = vmatpush3.bf16.msra.mxu1 %v252_v0  ;;  %v20_v6 = vld [vmem:[%s370_s0 + $0x20] sm:$0xff]  ;;  %v24_v7 = vpack.c.bf16 %v17_v5, %v16_v4  ;;  %v21_v8 = vld [vmem:[%s370_s0 + $0x28] sm:$0xff] }
   0x4   :  { %211 = vmatprep.subr.bf16.mxu0 %v253_v1  ;;  %234 = vmatprep.subr.bf16.mxu1 %v253_v1  ;;  %v26_v9 = vpack.c.bf16 %v21_v8, %v20_v6 }
   0x7   :  { %212 = vmatpush3.bf16.msra.mxu0 %v253_v1  ;;  %242 = vmatpush3.bf16.msra.mxu1 %v253_v1 }
   0x8   :  { %213 = vmatprep.subr.bf16.mxu0 %v254_v2  ;;  %235 = vmatprep.subr.bf16.mxu1 %v254_v2 }
   0x9   :  { %8 = vsyncpa [#allocation3], 0  ;;  %v256_v10 = vld [vmem:[%s371_s1 + $0x20] sm:$0xff]   ;;  %225 = vmatprep.mubr.bf16.mxu0 %v24_v7  ;;  %229 = vmatprep.mubr.bf16.mxu1 %v26_v9  ;;  %v257_v11 = vld [vmem:[%s371_s1 + $0x28] sm:$0xff]   ;;  %s284_s18 = smov [#allocation2]  }
   0xa   :  { %v258_v12 = vld [vmem:[%s371_s1 + $0x30] sm:$0xff]   ;;  %v259_v13 = vld [vmem:[%s371_s1 + $0x38] sm:$0xff]   ;;  %v188_v20 = vld [vmem:[%s372_s2] ss:$0 sm:$0xff]  ;;  %s177_s19 = sshll.u32 %s284_s18, 4  ;;  %s178_s19 = int_to_ptr.vmem [resolvable:$true] %s177_s19 }
   0xb   :  { %214 = vmatpush3.bf16.msra.mxu0 %v254_v2  ;;  %243 = vmatpush3.bf16.msra.mxu1 %v254_v2  ;;  %v18_v14 = vld [vmem:[%s370_s0 + $0x10] sm:$0xff]  ;;  %v19_v15 = vld [vmem:[%s370_s0 + $0x18] sm:$0xff]  ;;  %p265_p1 = scmp.lt.s32.totalorder %s178_s19, %s178_s19 }
   0xc   :  { %215 = vmatprep.subr.bf16.mxu0 %v255_v3  ;;  %236 = vmatprep.subr.bf16.mxu1 %v255_v3  ;;  %v22_v16 = vld [vmem:[%s370_s0 + $0x30] sm:$0xff]  ;;  %v23_v17 = vld [vmem:[%s370_s0 + $0x38] sm:$0xff]  ;;  %v25_v18 = vpack.c.bf16 %v19_v15, %v18_v14  ;;  %s260_s0 = scalar_lea.vmem %s178_s19, 1024 }
   0xd   :  { %v27_v19 = vpack.c.bf16 %v23_v17, %v22_v16  ;;  %p261_p0 = scmp.ne.s32.totalorder %s178_s19, %s260_s0  ;;  %p266_p2 = scmp.lt.s32.totalorder %s260_s0, %s260_s0 }
   0xf   :  { %216 = vmatpush3.bf16.msra.mxu0 %v255_v3  ;;  %244 = vmatpush3.bf16.msra.mxu1 %v255_v3  ;;  %p267_p3 = por %p266_p2, %p265_p1 }
  0x10   :  { %217 = vmatprep.subr.bf16.mxu0 %v256_v10  ;;  %237 = vmatprep.subr.bf16.mxu1 %v256_v10 }
  0x11   :  { %p268_p4 = pnand %p267_p3, %p261_p0 }
  0x13   :  { %218 = vmatpush3.bf16.msra.mxu0 %v256_v10  ;;  %245 = vmatpush3.bf16.msra.mxu1 %v256_v10 }
  0x14   :  { %219 = vmatprep.subr.bf16.mxu0 %v257_v11  ;;  %238 = vmatprep.subr.bf16.mxu1 %v257_v11 }
  0x17   :  { %220 = vmatpush3.bf16.msra.mxu0 %v257_v11  ;;  %246 = vmatpush3.bf16.msra.mxu1 %v257_v11 }
  0x18   :  { %221 = vmatprep.subr.bf16.mxu0 %v258_v12  ;;  %239 = vmatprep.subr.bf16.mxu1 %v258_v12 }
  0x1b   :  { %222 = vmatpush3.bf16.msra.mxu0 %v258_v12  ;;  %247 = vmatpush3.bf16.msra.mxu1 %v258_v12 }
  0x1c   :  { %223 = vmatprep.subr.bf16.mxu0 %v259_v13  ;;  %240 = vmatprep.subr.bf16.mxu1 %v259_v13 }
  0x1f   :  { %224 = vmatpush3.bf16.msra.mxu0 %v259_v13  ;;  %248 = vmatpush3.bf16.msra.mxu1 %v259_v13 }
  0x22   :  { %226 = vmatmul.mubr.bf16.vlgmr.msra.gmra.mrb[0].mxu0 %v25_v18  ;;  %230 = vmatmul.mubr.bf16.vlgmr.msra.gmra.mrb[0].mxu1 %v27_v19 }
  0xf5   :  { %v227_v21 = vpop.f32.mrb[0].mxu0  ;;  %v231_v22 = vpop.f32.mrb[0].mxu1 }
  0xf6   :  { %v142_v23 = vadd.f32 %v227_v21, %v188_v20  ;;  %v158_v24 = vadd.f32 %v231_v22, %v188_v20  ;;  %v133_v25 = vpop.f32.mrb[1].mxu0  ;;  %v149_v26 = vpop.f32.mrb[1].mxu1 }
  0xf7   :  { %v134_v27 = vadd.f32 %v188_v20, %v133_v25  ;;  %v150_v28 = vadd.f32 %v188_v20, %v149_v26  ;;  %v228_v29 = vpop.f32.mrb[2].mxu0  ;;  %v232_v30 = vpop.f32.mrb[2].mxu1 }
  0xf8   :  { %166 = vst [vmem:[#allocation2 + $0x10] sm:$0xff] %v142_v23  ;;  %170 = vst [vmem:[#allocation2 + $0x30] sm:$0xff] %v158_v24  ;;  %v145_v31 = vadd.f32 %v228_v29, %v188_v20  ;;  %v161_v32 = vadd.f32 %v232_v30, %v188_v20  ;;  %v136_v33 = vpop.f32.mrb[3].mxu0  ;;  %v152_v34 = vpop.f32.mrb[3].mxu1 }
  0xf9   :  { %164 = vst [vmem:[#allocation2] sm:$0xff] %v134_v27  ;;  %168 = vst [vmem:[#allocation2 + $0x20] sm:$0xff] %v150_v28  ;;  %v137_v35 = vadd.f32 %v188_v20, %v136_v33  ;;  %v153_v36 = vadd.f32 %v188_v20, %v152_v34 }
  0xfa   :  { %167 = vst [vmem:[#allocation2 + $0x18] sm:$0xff] %v145_v31  ;;  %171 = vst [vmem:[#allocation2 + $0x38] sm:$0xff] %v161_v32 }
  0xfb   :  { %165 = vst [vmem:[#allocation2 + $0x8] sm:$0xff] %v137_v35  ;;  %169 = vst [vmem:[#allocation2 + $0x28] sm:$0xff] %v153_v36 }
  0xfc   :  { %271 = shalt.err (!%p268_p4)
}
  0xfd   :  { %s272_s21 = scalar_lea.hbm %s373_s3, 1024 }
  0xfe   :  { %p273_p5 = scmp.ne.s32.totalorder %s373_s3, %s272_s21  ;;  %p276_p6 = scmp.lt.u32.totalorder %s272_s21, %s373_s3 }
 0x100   :  { %p278_p7 = pnand %p276_p6, %p273_p5 }
 0x102   :  { %281 = shalt.err (!%p278_p7)
}
 0x103   :  { %s285_s26 = smov 128   ;;  %s286_s27 = smov 8  }
 0x104   :  { %183 = dma.vmem_to_hbm [thread:$0]  %s178_s19, 1024, %s373_s3, [#allocation3], %s285_s26, %s285_s26, %s286_s27  }
 0x105   :  { %282 = dma.done.wait [#allocation3], 1024  }
 0x106   :  { %283 = vsyncadd [#allocation3], 4294966272 }
 0x107   :  { %187 = vsyncpa [#allocation3], 1 }

// kernel: decoder_rnn_forward.3
= control target key start
LH: loop header
LB: loop body
LE: loop exit
PB: predicated region body
PF: predicated region fallthrough
CT: control target
= control target key end

     0   :  { %v457_v1 = vmov 0   ;;  %vm113_vm0 = vcmask 261120   ;;  %v33_v13 = vlaneseq  ;;  %s613_s1 = inlined_call_operand.vmem [shape: bf16[32,512], index: 1, kind: input, shape index: {}]   ;;  %s614_s0 = inlined_call_operand.vmem [shape: bf16[64,32], index: 0, kind: input, shape index: {}]   ;;  %s615_s2 = inlined_call_operand.vmem [shape: f32[1,512], index: 2, kind: input, shape index: {}]   ;;  %s616_s3 = inlined_call_operand.vmem [shape: bf16[64,512], index: 3, kind: output, shape index: {}]  }
   0x1   :  { %v441_v0 = vld [vmem:[%s613_s1 + $0x4] ss:$16 sps:$4 sm:$0xff]   ;;  %158 = vmatprep.mubr.bf16.mxu0 %v457_v1  ;;  %231 = vmatprep.mubr.bf16.mxu1 %v457_v1  ;;  %v443_v2 = vld [vmem:[%s613_s1 + $0xc] ss:$16 sps:$4 sm:$0xff]   ;;  %v445_v3 = vld [vmem:[%s613_s1] ss:$16 sps:$4 sm:$0xff]  }
   0x2   :  { %126 = vmatprep.subr.bf16.mxu0 %v441_v0  ;;  %v446_v4 = vld [vmem:[%s613_s1 + $0x8] ss:$16 sps:$4 sm:$0xff]   ;;  %199 = vmatprep.subr.bf16.mxu1 %v443_v2  ;;  %v447_v5 = vld [vmem:[%s613_s1 + $0x24] ss:$16 sps:$4 sm:$0xff]   ;;  %v449_v6 = vld [vmem:[%s613_s1 + $0x2c] ss:$16 sps:$4 sm:$0xff]  }
   0x3   :  { %127 = vmatpush1.bf16.msra.mxu0 %v445_v3  ;;  %200 = vmatpush1.bf16.msra.mxu1 %v446_v4  ;;  %v451_v7 = vld [vmem:[%s613_s1 + $0x20] ss:$16 sps:$4 sm:$0xff]   ;;  %v452_v8 = vld [vmem:[%s613_s1 + $0x28] ss:$16 sps:$4 sm:$0xff]   ;;  %v34_v14 = vshrl.u32 %v33_v13, 7 }
   0x4   :  { %128 = vmatprep.subr.bf16.mxu0 %v447_v5  ;;  %201 = vmatprep.subr.bf16.mxu1 %v449_v6  ;;  %v453_v9 = vld [vmem:[%s614_s0] sm:$0xff]   ;;  %v454_v10 = vld [vmem:[%s614_s0 + $0x8] sm:$0xff]   ;;  %v455_v11 = vld [vmem:[%s614_s0 + $0x10] sm:$0xff]  }
   0x5   :  { %v456_v12 = vld [vmem:[%s614_s0 + $0x18] sm:$0xff]   ;;  %v35_v15 = vsub.s32 0, %v34_v14  ;;  %v43_v16 = vsub.s32 2, %v34_v14  ;;  %v31_v17 = vld [vmem:[%s615_s2] sm:$0xf]  ;;  %v39_v18 = vsub.s32 1, %v34_v14 }
   0x6   :  { %v47_v19 = vsub.s32 3, %v34_v14 }
   0x7   :  { %129 = vmatpush1.bf16.msra.mxu0 %v451_v7  ;;  %202 = vmatpush1.bf16.msra.mxu1 %v452_v8  ;;  %v525_v20 = vrot.slane %v31_v17, %v35_v15  ;;  %v527_v21 = vrot.slane %v31_v17, %v43_v16  ;;  %v529_v22 = vrot.slane %v31_v17, %v39_v18 }
   0x8   :  { %v531_v23 = vrot.slane %v31_v17, %v47_v19 }
   0xa   :  { %400 = vmatmul.mubr.msk.bf16.vlgmr.msra.gmra.mrb[0].mxu0 %vm113_vm0, %v453_v9  ;;  %404 = vmatmul.mubr.msk.bf16.vlgmr.msra.gmra.mrb[0].mxu1 %vm113_vm0, %v453_v9 }
   0xb   :  { %168 = vmatprep.mubr.bf16.mxu0 %v457_v1  ;;  %241 = vmatprep.mubr.bf16.mxu1 %v457_v1 }
  0x12   :  { %401 = vmatmul.mubr.msk.bf16.gmra.mrb[4].mxu0 %vm113_vm0, %v454_v10  ;;  %405 = vmatmul.mubr.msk.bf16.gmra.mrb[4].mxu1 %vm113_vm0, %v454_v10 }
  0x13   :  { %178 = vmatprep.mubr.bf16.mxu0 %v457_v1  ;;  %251 = vmatprep.mubr.bf16.mxu1 %v457_v1 }
  0x1a   :  { %402 = vmatmul.mubr.msk.bf16.gmra.mrb[8].mxu0 %vm113_vm0, %v455_v11  ;;  %406 = vmatmul.mubr.msk.bf16.gmra.mrb[8].mxu1 %vm113_vm0, %v455_v11 }
  0x1b   :  { %188 = vmatprep.mubr.bf16.mxu0 %v457_v1  ;;  %261 = vmatprep.mubr.bf16.mxu1 %v457_v1 }
  0x22   :  { %403 = vmatmul.mubr.msk.bf16.gmra.mrb[12].mxu0 %vm113_vm0, %v456_v12  ;;  %407 = vmatmul.mubr.msk.bf16.gmra.mrb[12].mxu1 %vm113_vm0, %v456_v12 }
  0xdd   :  { %v160_v24 = vpop.f32.mrb[0].mxu0  ;;  %v233_v25 = vpop.f32.mrb[0].mxu1 }
  0xde   :  { %v161_v26 = vadd.f32 %v160_v24, %v525_v20  ;;  %v234_v27 = vadd.f32 %v233_v25, %v527_v21  ;;  %v162_v28 = vpop.f32.mrb[1].mxu0  ;;  %v235_v29 = vpop.f32.mrb[1].mxu1 }
  0xdf   :  { %v163_v30 = vadd.f32 %v162_v28, %v529_v22  ;;  %v236_v31 = vadd.f32 %v235_v29, %v531_v23  ;;  %v164_v32 = vpop.f32.mrb[2].mxu0  ;;  %v237_v33 = vpop.f32.mrb[2].mxu1 }
  0xe0   :  { %v165_v34 = vadd.f32 %v164_v32, %v525_v20  ;;  %v238_v35 = vadd.f32 %v237_v33, %v527_v21  ;;  %v166_v36 = vpop.f32.mrb[3].mxu0  ;;  %v239_v37 = vpop.f32.mrb[3].mxu1 }
  0xe1   :  { %v424_v38 = vpack.c.bf16 %v163_v30, %v161_v26  ;;  %v425_v39 = vpack.c.bf16 %v236_v31, %v234_v27  ;;  %v167_v40 = vadd.f32 %v166_v36, %v529_v22  ;;  %v240_v41 = vadd.f32 %v239_v37, %v531_v23 }
  0xe3   :  { %368 = vst [vmem:[%s616_s3] sm:$0xff] %v424_v38  ;;  %369 = vst [vmem:[%s616_s3 + $0x8] sm:$0xff] %v425_v39  ;;  %v426_v42 = vpack.c.bf16 %v167_v40, %v165_v34  ;;  %v427_v43 = vpack.c.bf16 %v240_v41, %v238_v35 }
  0xe5   :  { %370 = vst [vmem:[%s616_s3 + $0x10] sm:$0xff] %v426_v42  ;;  %371 = vst [vmem:[%s616_s3 + $0x18] sm:$0xff] %v427_v43  ;;  %v170_v44 = vpop.f32.mrb[4].mxu0  ;;  %v243_v45 = vpop.f32.mrb[4].mxu1 }
  0xe6   :  { %v171_v46 = vadd.f32 %v170_v44, %v525_v20  ;;  %v244_v47 = vadd.f32 %v243_v45, %v527_v21  ;;  %v172_v48 = vpop.f32.mrb[5].mxu0  ;;  %v245_v49 = vpop.f32.mrb[5].mxu1 }
  0xe7   :  { %v173_v50 = vadd.f32 %v172_v48, %v529_v22  ;;  %v246_v51 = vadd.f32 %v245_v49, %v531_v23  ;;  %v174_v52 = vpop.f32.mrb[6].mxu0  ;;  %v247_v53 = vpop.f32.mrb[6].mxu1 }
  0xe8   :  { %v175_v54 = vadd.f32 %v174_v52, %v525_v20  ;;  %v248_v55 = vadd.f32 %v247_v53, %v527_v21  ;;  %v176_v56 = vpop.f32.mrb[7].mxu0  ;;  %v249_v57 = vpop.f32.mrb[7].mxu1 }
  0xe9   :  { %v428_v58 = vpack.c.bf16 %v173_v50, %v171_v46  ;;  %v429_v59 = vpack.c.bf16 %v246_v51, %v244_v47  ;;  %v177_v60 = vadd.f32 %v176_v56, %v529_v22  ;;  %v250_v61 = vadd.f32 %v249_v57, %v531_v23 }
  0xeb   :  { %372 = vst [vmem:[%s616_s3 + $0x20] sm:$0xff] %v428_v58  ;;  %373 = vst [vmem:[%s616_s3 + $0x28] sm:$0xff] %v429_v59  ;;  %v430_v62 = vpack.c.bf16 %v177_v60, %v175_v54  ;;  %v431_v63 = vpack.c.bf16 %v250_v61, %v248_v55 }
  0xed   :  { %374 = vst [vmem:[%s616_s3 + $0x30] sm:$0xff] %v430_v62  ;;  %375 = vst [vmem:[%s616_s3 + $0x38] sm:$0xff] %v431_v63  ;;  %v180_v0 = vpop.f32.mrb[8].mxu0  ;;  %v253_v1 = vpop.f32.mrb[8].mxu1 }
  0xee   :  { %v181_v2 = vadd.f32 %v180_v0, %v525_v20  ;;  %v254_v3 = vadd.f32 %v253_v1, %v527_v21  ;;  %v182_v4 = vpop.f32.mrb[9].mxu0  ;;  %v255_v5 = vpop.f32.mrb[9].mxu1 }
  0xef   :  { %v183_v6 = vadd.f32 %v182_v4, %v529_v22  ;;  %v256_v7 = vadd.f32 %v255_v5, %v531_v23  ;;  %v184_v8 = vpop.f32.mrb[10].mxu0  ;;  %v257_v9 = vpop.f32.mrb[10].mxu1 }
  0xf0   :  { %v185_v10 = vadd.f32 %v184_v8, %v525_v20  ;;  %v258_v11 = vadd.f32 %v257_v9, %v527_v21  ;;  %v186_v12 = vpop.f32.mrb[11].mxu0  ;;  %v259_v13 = vpop.f32.mrb[11].mxu1 }
  0xf1   :  { %v432_v14 = vpack.c.bf16 %v183_v6, %v181_v2  ;;  %v433_v15 = vpack.c.bf16 %v256_v7, %v254_v3  ;;  %v187_v16 = vadd.f32 %v186_v12, %v529_v22  ;;  %v260_v17 = vadd.f32 %v259_v13, %v531_v23 }
  0xf3   :  { %376 = vst [vmem:[%s616_s3 + $0x40] sm:$0xff] %v432_v14  ;;  %377 = vst [vmem:[%s616_s3 + $0x48] sm:$0xff] %v433_v15  ;;  %v434_v18 = vpack.c.bf16 %v187_v16, %v185_v10  ;;  %v435_v19 = vpack.c.bf16 %v260_v17, %v258_v11 }
  0xf5   :  { %378 = vst [vmem:[%s616_s3 + $0x50] sm:$0xff] %v434_v18  ;;  %379 = vst [vmem:[%s616_s3 + $0x58] sm:$0xff] %v435_v19  ;;  %v190_v24 = vpop.f32.mrb[12].mxu0  ;;  %v263_v25 = vpop.f32.mrb[12].mxu1 }
  0xf6   :  { %v191_v26 = vadd.f32 %v190_v24, %v525_v20  ;;  %v264_v27 = vadd.f32 %v263_v25, %v527_v21  ;;  %v192_v28 = vpop.f32.mrb[13].mxu0  ;;  %v265_v29 = vpop.f32.mrb[13].mxu1 }
  0xf7   :  { %v193_v30 = vadd.f32 %v192_v28, %v529_v22  ;;  %v266_v31 = vadd.f32 %v265_v29, %v531_v23  ;;  %v194_v32 = vpop.f32.mrb[14].mxu0  ;;  %v267_v33 = vpop.f32.mrb[14].mxu1 }
  0xf8   :  { %v195_v34 = vadd.f32 %v194_v32, %v525_v20  ;;  %v268_v35 = vadd.f32 %v267_v33, %v527_v21  ;;  %v196_v36 = vpop.f32.mrb[15].mxu0  ;;  %v269_v37 = vpop.f32.mrb[15].mxu1 }
  0xf9   :  { %v436_v38 = vpack.c.bf16 %v193_v30, %v191_v26  ;;  %v437_v39 = vpack.c.bf16 %v266_v31, %v264_v27  ;;  %v197_v40 = vadd.f32 %v196_v36, %v529_v22  ;;  %v270_v41 = vadd.f32 %v269_v37, %v531_v23 }
  0xfb   :  { %380 = vst [vmem:[%s616_s3 + $0x60] sm:$0xff] %v436_v38  ;;  %381 = vst [vmem:[%s616_s3 + $0x68] sm:$0xff] %v437_v39  ;;  %v438_v42 = vpack.c.bf16 %v197_v40, %v195_v34  ;;  %v439_v20 = vpack.c.bf16 %v270_v41, %v268_v35 }
  0xfd   :  { %382 = vst [vmem:[%s616_s3 + $0x70] sm:$0xff] %v438_v42  ;;  %383 = vst [vmem:[%s616_s3 + $0x78] sm:$0xff] %v439_v20 }

// kernel: decoder_rnn_forward.4
= control target key start
LH: loop header
LB: loop body
LE: loop exit
PB: predicated region body
PF: predicated region fallthrough
CT: control target
= control target key end

     0   :  { %s4375_s0 = inlined_call_operand.vmem [shape: bf16[8,8,512], index: 0, kind: input, shape index: {}]   ;;  %s4376_s1 = inlined_call_operand.vmem [shape: f32[128,512], index: 1, kind: input, shape index: {}]   ;;  %s4377_s2 = inlined_call_operand.vmem [shape: f32[8,8,128], index: 2, kind: output, shape index: {}]  }
   0x1   :  { %v3399_v0 = vld [vmem:[%s4376_s1] sm:$0xff]  ;;  %v3404_v1 = vld [vmem:[%s4376_s1 + $0x8] sm:$0xff]  ;;  %v3409_v2 = vld [vmem:[%s4376_s1 + $0x10] sm:$0xff] }
   0x2   :  { %v3414_v3 = vld [vmem:[%s4376_s1 + $0x18] sm:$0xff]  ;;  %v53_v4 = vld [vmem:[%s4376_s1 + $0x20] sm:$0xff]  ;;  %v55_v5 = vld [vmem:[%s4376_s1 + $0x28] sm:$0xff] }
   0x3   :  { %v3425_v6 = vld [vmem:[%s4376_s1 + $0x30] sm:$0xff]  ;;  %v3430_v7 = vld [vmem:[%s4376_s1 + $0x38] sm:$0xff]  ;;  %v3435_v8 = vld [vmem:[%s4376_s1 + $0x40] sm:$0xff] }
   0x4   :  { %v63_v9 = vld [vmem:[%s4376_s1 + $0x48] sm:$0xff]  ;;  %v3443_v10 = vld [vmem:[%s4376_s1 + $0x50] sm:$0xff]  ;;  %v3448_v11 = vld [vmem:[%s4376_s1 + $0x58] sm:$0xff] }
   0x5   :  { %v69_v12 = vld [vmem:[%s4376_s1 + $0x60] sm:$0xff]  ;;  %v71_v13 = vld [vmem:[%s4376_s1 + $0x68] sm:$0xff]  ;;  %v3459_v14 = vld [vmem:[%s4376_s1 + $0x70] sm:$0xff] }
   0x6   :  { %v75_v15 = vld [vmem:[%s4376_s1 + $0x78] sm:$0xff]  ;;  %v3467_v16 = vld [vmem:[%s4376_s1 + $0x80] sm:$0xff]  ;;  %v79_v17 = vld [vmem:[%s4376_s1 + $0x88] sm:$0xff] }
   0x7   :  { %v3475_v18 = vld [vmem:[%s4376_s1 + $0x90] sm:$0xff]  ;;  %v3480_v19 = vld [vmem:[%s4376_s1 + $0x98] sm:$0xff]  ;;  %v3485_v20 = vld [vmem:[%s4376_s1 + $0xa0] sm:$0xff] }
   0x8   :  { %v87_v21 = vld [vmem:[%s4376_s1 + $0xa8] sm:$0xff]  ;;  %v3493_v22 = vld [vmem:[%s4376_s1 + $0xb0] sm:$0xff]  ;;  %v91_v23 = vld [vmem:[%s4376_s1 + $0xb8] sm:$0xff] }
   0x9   :  { %v3501_v24 = vld [vmem:[%s4376_s1 + $0xc0] sm:$0xff]  ;;  %v3506_v25 = vld [vmem:[%s4376_s1 + $0xc8] sm:$0xff]  ;;  %v3511_v26 = vld [vmem:[%s4376_s1 + $0xd0] sm:$0xff] }
   0xa   :  { %v3516_v27 = vld [vmem:[%s4376_s1 + $0xd8] sm:$0xff]  ;;  %v3521_v28 = vld [vmem:[%s4376_s1 + $0xe0] sm:$0xff]  ;;  %v103_v29 = vld [vmem:[%s4376_s1 + $0xe8] sm:$0xff] }
   0xb   :  { %v3529_v30 = vld [vmem:[%s4376_s1 + $0xf0] sm:$0xff]  ;;  %v107_v31 = vld [vmem:[%s4376_s1 + $0xf8] sm:$0xff]  ;;  %v3537_v32 = vld [vmem:[%s4376_s1 + $0x100] sm:$0xff] }
   0xc   :  { %v3542_v33 = vld [vmem:[%s4376_s1 + $0x108] sm:$0xff]  ;;  %v3547_v34 = vld [vmem:[%s4376_s1 + $0x110] sm:$0xff]  ;;  %v3552_v35 = vld [vmem:[%s4376_s1 + $0x118] sm:$0xff] }
   0xd   :  { %v3557_v36 = vld [vmem:[%s4376_s1 + $0x120] sm:$0xff]  ;;  %v119_v37 = vld [vmem:[%s4376_s1 + $0x128] sm:$0xff]  ;;  %v3565_v38 = vld [vmem:[%s4376_s1 + $0x130] sm:$0xff] }
   0xe   :  { %v123_v39 = vld [vmem:[%s4376_s1 + $0x138] sm:$0xff]  ;;  %v3573_v40 = vld [vmem:[%s4376_s1 + $0x140] sm:$0xff]  ;;  %v3578_v41 = vld [vmem:[%s4376_s1 + $0x148] sm:$0xff] }
   0xf   :  { %v3583_v42 = vld [vmem:[%s4376_s1 + $0x150] sm:$0xff]  ;;  %v3588_v43 = vld [vmem:[%s4376_s1 + $0x158] sm:$0xff]  ;;  %v3593_v44 = vld [vmem:[%s4376_s1 + $0x160] sm:$0xff] }
  0x10   :  { %v135_v45 = vld [vmem:[%s4376_s1 + $0x168] sm:$0xff]  ;;  %v3601_v46 = vld [vmem:[%s4376_s1 + $0x170] sm:$0xff]  ;;  %v139_v47 = vld [vmem:[%s4376_s1 + $0x178] sm:$0xff] }
  0x11   :  { %v3609_v48 = vld [vmem:[%s4376_s1 + $0x180] sm:$0xff]  ;;  %v3614_v49 = vld [vmem:[%s4376_s1 + $0x188] sm:$0xff]  ;;  %v3619_v50 = vld [vmem:[%s4376_s1 + $0x190] sm:$0xff] }
  0x12   :  { %v3624_v51 = vld [vmem:[%s4376_s1 + $0x198] sm:$0xff]  ;;  %v3629_v52 = vld [vmem:[%s4376_s1 + $0x1a0] sm:$0xff]  ;;  %v151_v53 = vld [vmem:[%s4376_s1 + $0x1a8] sm:$0xff] }
  0x13   :  { %v3637_v54 = vld [vmem:[%s4376_s1 + $0x1b0] sm:$0xff]  ;;  %v155_v55 = vld [vmem:[%s4376_s1 + $0x1b8] sm:$0xff]  ;;  %v3645_v56 = vld [vmem:[%s4376_s1 + $0x1c0] sm:$0xff] }
  0x14   :  { %4378 = vst [vmem:[#allocation8_spill] sm:$0xff] %v3645_v56  ;;  %v3650_v57 = vld [vmem:[%s4376_s1 + $0x1c8] sm:$0xff]  ;;  %v3655_v58 = vld [vmem:[%s4376_s1 + $0x1d0] sm:$0xff]  ;;  %v3660_v59 = vld [vmem:[%s4376_s1 + $0x1d8] sm:$0xff] }
  0x15   :  { %4379 = vst [vmem:[#allocation9_spill] sm:$0xff] %v3655_v58  ;;  %4380 = vst [vmem:[#allocation10_spill] sm:$0xff] %v3660_v59  ;;  %v3665_v60 = vld [vmem:[%s4376_s1 + $0x1e0] sm:$0xff]  ;;  %v167_v61 = vld [vmem:[%s4376_s1 + $0x1e8] sm:$0xff] }
  0x16   :  { %4381 = vst [vmem:[#allocation11_spill] sm:$0xff] %v3665_v60  ;;  %v3673_v62 = vld [vmem:[%s4376_s1 + $0x1f0] sm:$0xff]  ;;  %v171_v63 = vld [vmem:[%s4376_s1 + $0x1f8] sm:$0xff] }
  0x17   :  { %4382 = vst [vmem:[#allocation12_spill] sm:$0xff] %v3673_v62 }
  0x18   :  { %180 = vsyncadd [#allocation5], 8192  ;;  %v3679_v58 = vpack.c.bf16 %v55_v5, %v3404_v1  ;;  %v3682_v56 = vpack.c.bf16 %v53_v4, %v3399_v0  ;;  %v3684_v60 = vpack.c.bf16 %v71_v13, %v63_v9 }
  0x19   :  { %3377 = dma.done.wait [#allocation5], 8192 }
  0x1a   :  { %3378 = vsyncadd [#allocation5], 4294959104  ;;  %2736 = vmatprep.subr.bf16.mxu0 %v3679_v58  ;;  %v3689_v62 = vpack.c.bf16 %v3430_v7, %v3414_v3  ;;  %v3693_v59 = vpack.c.bf16 %v3425_v6, %v3409_v2  ;;  %v3697_v1 = vpack.c.bf16 %v69_v12, %v3435_v8  ;;  %v3700_v0 = vpack.c.bf16 %v75_v15, %v3448_v11 }
  0x1b   :  { %2738 = vmatpush1.bf16.msra.mxu0 %v3682_v56  ;;  %v3703_v4 = vpack.c.bf16 %v87_v21, %v79_v17  ;;  %v3709_v2 = vpack.c.bf16 %v3459_v14, %v3443_v10  ;;  %v3713_v3 = vpack.c.bf16 %v91_v23, %v3480_v19  ;;  %v3379_v5 = vmov 0.0  }
  0x1c   :  { %2740 = vmatprep.subr.bf16.mxu0 %v3684_v60  ;;  %2768 = vmatprep.subr.bf16.mxu1 %v3689_v62  ;;  %v3719_v6 = vpack.c.bf16 %v3485_v20, %v3467_v16  ;;  %v3723_v7 = vpack.c.bf16 %v103_v29, %v3506_v25  ;;  %v3729_v8 = vpack.c.bf16 %v3493_v22, %v3475_v18  ;;  %v4383_v25 = vld [vmem:[#allocation10_spill] sm:$0xff] }
  0x1d   :  { %2770 = vmatpush1.bf16.msra.mxu1 %v3693_v59  ;;  %323 = vmatprep.mubr.f32.mxu0 %v3379_v5  ;;  %v3733_v9 = vpack.c.bf16 %v107_v31, %v3516_v27  ;;  %v3738_v10 = vpack.c.bf16 %v3521_v28, %v3501_v24  ;;  %v3742_v11 = vpack.c.bf16 %v119_v37, %v3542_v33  ;;  %v4384_v27 = vld [vmem:[#allocation8_spill] sm:$0xff]  ;;  %v4385_v28 = vld [vmem:[#allocation11_spill] sm:$0xff]  ;;  %v190_v37 = vld [vmem:[%s4375_s0 + $0x8] sm:$0xff] }
  0x1e   :  { %2772 = vmatprep.subr.bf16.mxu1 %v3700_v0  ;;  %394 = vmatprep.mubr.f32.mxu1 %v3379_v5  ;;  %v3747_v12 = vpack.c.bf16 %v3529_v30, %v3511_v26  ;;  %v3751_v13 = vpack.c.bf16 %v123_v39, %v3552_v35  ;;  %v3756_v14 = vpack.c.bf16 %v3557_v36, %v3537_v32  ;;  %v4386_v30 = vld [vmem:[#allocation9_spill] sm:$0xff]  ;;  %v4387_v31 = vld [vmem:[#allocation12_spill] sm:$0xff] }
  0x1f   :  { %2742 = vmatpush1.bf16.msra.mxu0 %v3697_v1  ;;  %v3760_v15 = vpack.c.bf16 %v135_v45, %v3578_v41  ;;  %v3765_v16 = vpack.c.bf16 %v3565_v38, %v3547_v34  ;;  %v3769_v17 = vpack.c.bf16 %v139_v47, %v3588_v43  ;;  %v3774_v18 = vpack.c.bf16 %v3593_v44, %v3573_v40  ;;  %v189_v33 = vld [vmem:[%s4375_s0] sm:$0xff] }
  0x20   :  { %2744 = vmatprep.subr.bf16.mxu0 %v3703_v4  ;;  %v3778_v19 = vpack.c.bf16 %v151_v53, %v3614_v49  ;;  %v3783_v20 = vpack.c.bf16 %v3601_v46, %v3583_v42  ;;  %v3787_v21 = vpack.c.bf16 %v155_v55, %v3624_v51  ;;  %v3792_v22 = vpack.c.bf16 %v3629_v52, %v3609_v48 }
  0x21   :  { %2774 = vmatpush1.bf16.msra.mxu1 %v3709_v2  ;;  %v3796_v23 = vpack.c.bf16 %v167_v61, %v3650_v57  ;;  %v3801_v24 = vpack.c.bf16 %v3637_v54, %v3619_v50  ;;  %v3805_v26 = vpack.c.bf16 %v171_v63, %v4383_v25  ;;  %v3810_v29 = vpack.c.bf16 %v4385_v28, %v4384_v27 }
  0x22   :  { %2776 = vmatprep.subr.bf16.mxu1 %v3713_v3  ;;  %v3816_v32 = vpack.c.bf16 %v4387_v31, %v4386_v30  ;;  %v191_v34 = vunpack.c.l.bf16 %v189_v33  ;;  %v192_v35 = vunpack.c.h.bf16 %v189_v33  ;;  %v194_v43 = vunpack.c.h.bf16 %v190_v37 }
  0x23   :  { %2746 = vmatpush1.bf16.msra.mxu0 %v3719_v6  ;;  %v193_v47 = vunpack.c.l.bf16 %v190_v37  ;;  %v3380_v30 = vmov 1966171168   ;;  %v434_v33 = vlaneseq }
  0x24   :  { %2748 = vmatprep.subr.bf16.mxu0 %v3723_v7  ;;  %v432_v31 = vunpack.c.l.s4 %v3380_v30 }
  0x25   :  { %2778 = vmatpush1.bf16.msra.mxu1 %v3729_v8 }
  0x26   :  { %2780 = vmatprep.subr.bf16.mxu1 %v3733_v9 }
  0x27   :  { %2750 = vmatpush1.bf16.msra.mxu0 %v3738_v10 }
  0x28   :  { %2752 = vmatprep.subr.bf16.mxu0 %v3742_v11 }
  0x29   :  { %2782 = vmatpush1.bf16.msra.mxu1 %v3747_v12 }
  0x2a   :  { %2784 = vmatprep.subr.bf16.mxu1 %v3751_v13 }
  0x2b   :  { %2754 = vmatpush1.bf16.msra.mxu0 %v3756_v14 }
  0x2c   :  { %2756 = vmatprep.subr.bf16.mxu0 %v3760_v15 }
  0x2d   :  { %2786 = vmatpush1.bf16.msra.mxu1 %v3765_v16 }
  0x2e   :  { %2788 = vmatprep.subr.bf16.mxu1 %v3769_v17 }
  0x2f   :  { %2758 = vmatpush1.bf16.msra.mxu0 %v3774_v18 }
  0x30   :  { %2760 = vmatprep.subr.bf16.mxu0 %v3778_v19 }
  0x31   :  { %2790 = vmatpush1.bf16.msra.mxu1 %v3783_v20 }
  0x32   :  { %2792 = vmatprep.subr.bf16.mxu1 %v3787_v21 }
  0x33   :  { %2762 = vmatpush1.bf16.msra.mxu0 %v3792_v22 }
  0x34   :  { %2764 = vmatprep.subr.bf16.mxu0 %v3796_v23 }
  0x35   :  { %2794 = vmatpush1.bf16.msra.mxu1 %v3801_v24 }
  0x36   :  { %2796 = vmatprep.subr.bf16.mxu1 %v3805_v26 }
  0x37   :  { %2766 = vmatpush1.bf16.msra.mxu0 %v3810_v29 }
  0x38   :  { %2800 = vmatprep.subr.bf16.mxu0 %v3679_v58 }
  0x39   :  { %2798 = vmatpush1.bf16.msra.mxu1 %v3816_v32 }
  0x3a   :  { %324 = vmatmul.mubr.f32.vlgmr.msra.gmra.mrb[0].mxu0 %v3379_v5  ;;  %2832 = vmatprep.subr.bf16.mxu1 %v3689_v62 }
  0x3b   :  { %2802 = vmatpush1.bf16.msra.mxu0 %v3682_v56  ;;  %630 = vmatprep.mubr.f32.mxu0 %v3379_v5 }
  0x3c   :  { %395 = vmatmul.mubr.f32.vlgmr.msra.gmra.mrb[0].mxu1 %v3379_v5  ;;  %2804 = vmatprep.subr.bf16.mxu0 %v3684_v60 }
  0x3d   :  { %2834 = vmatpush1.bf16.msra.mxu1 %v3693_v59  ;;  %701 = vmatprep.mubr.f32.mxu1 %v3379_v5 }
  0x3e   :  { %2836 = vmatprep.subr.bf16.mxu1 %v3700_v0 }
  0x3f   :  { %2806 = vmatpush1.bf16.msra.mxu0 %v3697_v1 }
  0x40   :  { %2808 = vmatprep.subr.bf16.mxu0 %v3703_v4 }
  0x41   :  { %2838 = vmatpush1.bf16.msra.mxu1 %v3709_v2 }
  0x42   :  { %2840 = vmatprep.subr.bf16.mxu1 %v3713_v3 }
  0x43   :  { %2810 = vmatpush1.bf16.msra.mxu0 %v3719_v6 }
  0x44   :  { %2812 = vmatprep.subr.bf16.mxu0 %v3723_v7 }
  0x45   :  { %2842 = vmatpush1.bf16.msra.mxu1 %v3729_v8 }
  0x46   :  { %2844 = vmatprep.subr.bf16.mxu1 %v3733_v9 }
  0x47   :  { %2814 = vmatpush1.bf16.msra.mxu0 %v3738_v10 }
  0x48   :  { %2816 = vmatprep.subr.bf16.mxu0 %v3742_v11 }
  0x49   :  { %2846 = vmatpush1.bf16.msra.mxu1 %v3747_v12 }
  0x4a   :  { %2848 = vmatprep.subr.bf16.mxu1 %v3751_v13 }
  0x4b   :  { %2818 = vmatpush1.bf16.msra.mxu0 %v3756_v14 }
  0x4c   :  { %2820 = vmatprep.subr.bf16.mxu0 %v3760_v15 }
  0x4d   :  { %2850 = vmatpush1.bf16.msra.mxu1 %v3765_v16 }
  0x4e   :  { %2852 = vmatprep.subr.bf16.mxu1 %v3769_v17 }
  0x4f   :  { %2822 = vmatpush1.bf16.msra.mxu0 %v3774_v18 }
  0x50   :  { %2824 = vmatprep.subr.bf16.mxu0 %v3778_v19 }
  0x51   :  { %2854 = vmatpush1.bf16.msra.mxu1 %v3783_v20 }
  0x52   :  { %2856 = vmatprep.subr.bf16.mxu1 %v3787_v21 }
  0x53   :  { %2826 = vmatpush1.bf16.msra.mxu0 %v3792_v22 }
  0x54   :  { %2828 = vmatprep.subr.bf16.mxu0 %v3796_v23 }
  0x55   :  { %2858 = vmatpush1.bf16.msra.mxu1 %v3801_v24 }
  0x56   :  { %2860 = vmatprep.subr.bf16.mxu1 %v3805_v26 }
  0x57   :  { %2830 = vmatpush1.bf16.msra.mxu0 %v3810_v29 }
  0x58   :  { %2864 = vmatprep.subr.bf16.mxu0 %v3679_v58 }
  0x59   :  { %2862 = vmatpush1.bf16.msra.mxu1 %v3816_v32 }
  0x5a   :  { %2896 = vmatprep.subr.bf16.mxu1 %v3689_v62 }
 0x10d   :  { %v325_v36 = vpop.f32.mrb[0].mxu0 }
 0x10e   :  { %v401_v38 = vadd.f32 %v325_v36, %v191_v34  ;;  %v327_v39 = vpop.f32.mrb[1].mxu0  ;;  %v433_v34 = vunpack.c.0.s8 %v432_v31 }
 0x10f   :  { %v402_v40 = vadd.f32 %v327_v39, %v192_v35  ;;  %v396_v41 = vpop.f32.mrb[0].mxu1  ;;  %v435_v35 = vshrl.u32 %v434_v33, 7 }
 0x110   :  { %v2664_v42 = vmul.f32 -1.442695, %v401_v38  ;;  %v398_v44 = vpop.f32.mrb[1].mxu1  ;;  %v403_v49 = vadd.f32 %v396_v41, %v193_v47 }
 0x111   :  { %v2665_v45 = vmul.f32 -1.442695, %v402_v40  ;;  %v404_v46 = vadd.f32 %v398_v44, %v194_v43  ;;  %v3868_v37 = vsub.s32 %v433_v34, %v435_v35 }
 0x112   :  { %3249 = vpow2.f32 %v2664_v42 }
 0x113   :  { %3251 = vpow2.f32 %v2665_v45  ;;  %v2666_v48 = vmul.f32 -1.442695, %v404_v46 }
 0x115   :  { %3253 = vpow2.f32 %v2666_v48 }
 0x116   :  { %3255 = vtanh.f32 %v403_v49 }
 0x11c   :  { %v3250_v50 = vpop.eup %3249 }
 0x11d   :  { %v3252_v51 = vpop.eup %3251  ;;  %v408_v52 = vadd.f32 1.0, %v3250_v50 }
 0x11e   :  { %v414_v53 = vadd.f32 1.0, %v3252_v51 }
 0x11f   :  { %3257 = vrcp.f32 %v408_v52  ;;  %v3254_v54 = vpop.eup %3253 }
 0x120   :  { %3259 = vrcp.f32 %v414_v53  ;;  %v3256_v55 = vpop.eup %3255  ;;  %v421_v61 = vadd.f32 1.0, %v3254_v54  ;;  %v2671_v53 = vld [vmem:[%s4375_s0 + $0x10] sm:$0xff] }
 0x121   :  { %v498_v54 = vunpack.c.l.bf16 %v2671_v53 }
 0x122   :  { %3261 = vrcp.f32 %v421_v61 }
 0x129   :  { %v3258_v57 = vpop.eup %3257 }
 0x12a   :  { %v3260_v63 = vpop.eup %3259  ;;  %v425_v25 = vmul.f32 %v3258_v57, %v3256_v55  ;;  %v499_v55 = vunpack.c.h.bf16 %v2671_v53 }
 0x12b   :  { %v424_v27 = vmul.f32 0.0, %v3260_v63 }
 0x12c   :  { %v3262_v36 = vpop.eup %3261 }
 0x12d   :  { %v3865_v28 = vadd.f32 %v425_v25, %v424_v27  ;;  %v2672_v25 = vld [vmem:[%s4375_s0 + $0x18] sm:$0xff] }
 0x12e   :  { %v501_v35 = vunpack.c.h.bf16 %v2672_v25 }
 0x12f   :  { %3263 = vtanh.f32 %v3865_v28 }
 0x139   :  { %v3264_v38 = vpop.eup %3263 }
 0x13a   :  { %v428_v39 = vmul.f32 %v3264_v38, %v3262_v36  ;;  %v500_v38 = vunpack.c.l.bf16 %v2672_v25 }
 0x13c   :  { %v430_v40 = vcombine.high %v428_v39, %v428_v39  ;;  %v437_v41 = vrot.slane %v428_v39, %v3868_v37  ;;  %631 = vmatmul.mubr.f32.vlgmr.msra.gmra.mrb[2].mxu0 %v428_v39  ;;  %702 = vmatmul.mubr.f32.vlgmr.msra.gmra.mrb[2].mxu1 %v428_v39 }
 0x13d   :  { %2866 = vmatpush1.bf16.msra.mxu0 %v3682_v56  ;;  %2898 = vmatpush1.bf16.msra.mxu1 %v3693_v59 }
 0x13e   :  { %v444_v42 = vrot.slane %v430_v40, %v3868_v37  ;;  %v445_v43 = vcombine.high %v437_v41, %v437_v41  ;;  %v453_v44 = vrot.slane %v437_v41, %v3868_v37  ;;  %2667 = vst.sshfl [vmem:[%s4377_s2] sm:$0x1 pattern:$0x73625140] %v437_v41  ;;  %2868 = vmatprep.subr.bf16.mxu0 %v3684_v60 }
 0x13f   :  { %2900 = vmatprep.subr.bf16.mxu1 %v3700_v0  ;;  %937 = vmatprep.mubr.f32.mxu0 %v3379_v5 }
 0x140   :  { %1008 = vmatprep.mubr.f32.mxu1 %v3379_v5  ;;  %v446_v45 = vcombine.high %v444_v42, %v444_v42  ;;  %v460_v46 = vrot.slane %v444_v42, %v3868_v37  ;;  %v467_v47 = vrot.slane %v445_v43, %v3868_v37  ;;  %v475_v48 = vcombine.high %v453_v44, %v453_v44 }
 0x141   :  { %2668 = vst.sshfl [vmem:[%s4377_s2 + $0x8] sm:$0x1 pattern:$0x73625140] %v445_v43  ;;  %2870 = vmatpush1.bf16.msra.mxu0 %v3697_v1  ;;  %2902 = vmatpush1.bf16.msra.mxu1 %v3709_v2 }
 0x142   :  { %2669 = vst.sshfl [vmem:[%s4377_s2 + $0x20] sm:$0x1 pattern:$0x73625140] %v444_v42  ;;  %v474_v49 = vrot.slane %v446_v45, %v3868_v37  ;;  %v476_v50 = vcombine.high %v460_v46, %v460_v46  ;;  %v477_v51 = vcombine.high %v467_v47, %v467_v47  ;;  %489 = vst [vmem:[%s4377_s2 + $0x10] sm:$0x1] %v475_v48  ;;  %2872 = vmatprep.subr.bf16.mxu0 %v3703_v4 }
 0x143   :  { %2670 = vst.sshfl [vmem:[%s4377_s2 + $0x28] sm:$0x1 pattern:$0x73625140] %v446_v45  ;;  %2904 = vmatprep.subr.bf16.mxu1 %v3713_v3 }
 0x144   :  { %v478_v52 = vcombine.high %v474_v49, %v474_v49  ;;  %490 = vst [vmem:[%s4377_s2 + $0x18] sm:$0x1] %v477_v51  ;;  %493 = vst [vmem:[%s4377_s2 + $0x30] sm:$0x1] %v476_v50 }
 0x145   :  { %2874 = vmatpush1.bf16.msra.mxu0 %v3719_v6  ;;  %2906 = vmatpush1.bf16.msra.mxu1 %v3729_v8 }
 0x146   :  { %494 = vst [vmem:[%s4377_s2 + $0x38] sm:$0x1] %v478_v52  ;;  %2876 = vmatprep.subr.bf16.mxu0 %v3723_v7  ;;  %2908 = vmatprep.subr.bf16.mxu1 %v3733_v9 }
 0x149   :  { %2878 = vmatpush1.bf16.msra.mxu0 %v3738_v10  ;;  %2910 = vmatpush1.bf16.msra.mxu1 %v3747_v12 }
 0x14a   :  { %2880 = vmatprep.subr.bf16.mxu0 %v3742_v11  ;;  %2912 = vmatprep.subr.bf16.mxu1 %v3751_v13 }
 0x14d   :  { %2882 = vmatpush1.bf16.msra.mxu0 %v3756_v14  ;;  %2914 = vmatpush1.bf16.msra.mxu1 %v3765_v16 }
 0x14e   :  { %2884 = vmatprep.subr.bf16.mxu0 %v3760_v15  ;;  %2916 = vmatprep.subr.bf16.mxu1 %v3769_v17 }
 0x151   :  { %2886 = vmatpush1.bf16.msra.mxu0 %v3774_v18  ;;  %2918 = vmatpush1.bf16.msra.mxu1 %v3783_v20 }
 0x152   :  { %2888 = vmatprep.subr.bf16.mxu0 %v3778_v19  ;;  %2920 = vmatprep.subr.bf16.mxu1 %v3787_v21 }
 0x155   :  { %2890 = vmatpush1.bf16.msra.mxu0 %v3792_v22  ;;  %2922 = vmatpush1.bf16.msra.mxu1 %v3801_v24 }
 0x156   :  { %2892 = vmatprep.subr.bf16.mxu0 %v3796_v23  ;;  %2924 = vmatprep.subr.bf16.mxu1 %v3805_v26 }
 0x159   :  { %2894 = vmatpush1.bf16.msra.mxu0 %v3810_v29  ;;  %2926 = vmatpush1.bf16.msra.mxu1 %v3816_v32 }
 0x15a   :  { %2928 = vmatprep.subr.bf16.mxu0 %v3679_v58  ;;  %2960 = vmatprep.subr.bf16.mxu1 %v3689_v62 }
 0x20f   :  { %v632_v57 = vpop.f32.mrb[2].mxu0  ;;  %v703_v61 = vpop.f32.mrb[2].mxu1 }
 0x210   :  { %v708_v63 = vadd.f32 %v632_v57, %v498_v54  ;;  %v634_v27 = vpop.f32.mrb[3].mxu0  ;;  %v705_v30 = vpop.f32.mrb[3].mxu1  ;;  %v710_v40 = vadd.f32 %v703_v61, %v500_v38 }
 0x211   :  { %v709_v31 = vadd.f32 %v634_v27, %v499_v55  ;;  %v711_v36 = vadd.f32 %v705_v30, %v501_v35 }
 0x212   :  { %v2673_v33 = vmul.f32 -1.442695, %v708_v63 }
 0x213   :  { %v2674_v34 = vmul.f32 -1.442695, %v709_v31  ;;  %v2675_v39 = vmul.f32 -1.442695, %v711_v36 }
 0x214   :  { %3265 = vpow2.f32 %v2673_v33 }
 0x215   :  { %3267 = vpow2.f32 %v2674_v34 }
 0x216   :  { %3269 = vpow2.f32 %v2675_v39  ;;  %v2680_v39 = vld [vmem:[%s4375_s0 + $0x20] sm:$0xff] }
 0x217   :  { %3271 = vtanh.f32 %v710_v40  ;;  %v805_v40 = vunpack.c.l.bf16 %v2680_v39 }
 0x21e   :  { %v3266_v41 = vpop.eup %3265 }
 0x21f   :  { %v3268_v42 = vpop.eup %3267  ;;  %v715_v43 = vadd.f32 1.0, %v3266_v41  ;;  %v806_v41 = vunpack.c.h.bf16 %v2680_v39 }
 0x220   :  { %v721_v44 = vadd.f32 1.0, %v3268_v42  ;;  %v3270_v45 = vpop.eup %3269 }
 0x221   :  { %3273 = vrcp.f32 %v715_v43  ;;  %v3272_v46 = vpop.eup %3271  ;;  %v728_v50 = vadd.f32 1.0, %v3270_v45  ;;  %v2681_v45 = vld [vmem:[%s4375_s0 + $0x28] sm:$0xff] }
 0x222   :  { %3275 = vrcp.f32 %v721_v44 }
 0x223   :  { %3277 = vrcp.f32 %v728_v50 }
 0x22b   :  { %v3274_v47 = vpop.eup %3273 }
 0x22c   :  { %v3276_v48 = vpop.eup %3275  ;;  %v732_v49 = vmul.f32 %v3274_v47, %v3272_v46 }
 0x22d   :  { %v731_v51 = vmul.f32 %v3276_v48, %v3865_v28  ;;  %v3278_v53 = vpop.eup %3277 }
 0x22f   :  { %v3941_v52 = vadd.f32 %v732_v49, %v731_v51  ;;  %v808_v51 = vunpack.c.h.bf16 %v2681_v45 }
 0x231   :  { %3279 = vtanh.f32 %v3941_v52 }
 0x23b   :  { %v3280_v54 = vpop.eup %3279 }
 0x23c   :  { %v735_v55 = vmul.f32 %v3280_v54, %v3278_v53  ;;  %v807_v54 = vunpack.c.l.bf16 %v2681_v45 }
 0x23e   :  { %v737_v57 = vcombine.high %v735_v55, %v735_v55  ;;  %v744_v61 = vrot.slane %v735_v55, %v3868_v37  ;;  %938 = vmatmul.mubr.f32.vlgmr.msra.gmra.mrb[4].mxu0 %v735_v55  ;;  %1009 = vmatmul.mubr.f32.vlgmr.msra.gmra.mrb[4].mxu1 %v735_v55 }
 0x23f   :  { %2930 = vmatpush1.bf16.msra.mxu0 %v3682_v56  ;;  %2962 = vmatpush1.bf16.msra.mxu1 %v3693_v59 }
 0x240   :  { %v751_v63 = vrot.slane %v737_v57, %v3868_v37  ;;  %v752_v28 = vcombine.high %v744_v61, %v744_v61  ;;  %v760_v25 = vrot.slane %v744_v61, %v3868_v37  ;;  %2676 = vst.sshfl [vmem:[%s4377_s2 + $0x1] sm:$0x1 pattern:$0x73625140] %v744_v61  ;;  %2932 = vmatprep.subr.bf16.mxu0 %v3684_v60 }
 0x241   :  { %2964 = vmatprep.subr.bf16.mxu1 %v3700_v0  ;;  %1244 = vmatprep.mubr.f32.mxu0 %v3379_v5 }
 0x242   :  { %1315 = vmatprep.mubr.f32.mxu1 %v3379_v5  ;;  %v753_v27 = vcombine.high %v751_v63, %v751_v63  ;;  %v767_v30 = vrot.slane %v751_v63, %v3868_v37  ;;  %v774_v31 = vrot.slane %v752_v28, %v3868_v37  ;;  %v782_v33 = vcombine.high %v760_v25, %v760_v25 }
 0x243   :  { %2677 = vst.sshfl [vmem:[%s4377_s2 + $0x9] sm:$0x1 pattern:$0x73625140] %v752_v28  ;;  %2934 = vmatpush1.bf16.msra.mxu0 %v3697_v1  ;;  %2966 = vmatpush1.bf16.msra.mxu1 %v3709_v2 }
 0x244   :  { %2678 = vst.sshfl [vmem:[%s4377_s2 + $0x21] sm:$0x1 pattern:$0x73625140] %v751_v63  ;;  %v781_v34 = vrot.slane %v753_v27, %v3868_v37  ;;  %v783_v35 = vcombine.high %v767_v30, %v767_v30  ;;  %v784_v36 = vcombine.high %v774_v31, %v774_v31  ;;  %796 = vst [vmem:[%s4377_s2 + $0x11] sm:$0x1] %v782_v33  ;;  %2936 = vmatprep.subr.bf16.mxu0 %v3703_v4 }
 0x245   :  { %2679 = vst.sshfl [vmem:[%s4377_s2 + $0x29] sm:$0x1 pattern:$0x73625140] %v753_v27  ;;  %2968 = vmatprep.subr.bf16.mxu1 %v3713_v3 }
 0x246   :  { %v785_v38 = vcombine.high %v781_v34, %v781_v34  ;;  %797 = vst [vmem:[%s4377_s2 + $0x19] sm:$0x1] %v784_v36  ;;  %800 = vst [vmem:[%s4377_s2 + $0x31] sm:$0x1] %v783_v35 }
 0x247   :  { %2938 = vmatpush1.bf16.msra.mxu0 %v3719_v6  ;;  %2970 = vmatpush1.bf16.msra.mxu1 %v3729_v8 }
 0x248   :  { %801 = vst [vmem:[%s4377_s2 + $0x39] sm:$0x1] %v785_v38  ;;  %2940 = vmatprep.subr.bf16.mxu0 %v3723_v7  ;;  %2972 = vmatprep.subr.bf16.mxu1 %v3733_v9 }
 0x24b   :  { %2942 = vmatpush1.bf16.msra.mxu0 %v3738_v10  ;;  %2974 = vmatpush1.bf16.msra.mxu1 %v3747_v12 }
 0x24c   :  { %2944 = vmatprep.subr.bf16.mxu0 %v3742_v11  ;;  %2976 = vmatprep.subr.bf16.mxu1 %v3751_v13 }
 0x24f   :  { %2946 = vmatpush1.bf16.msra.mxu0 %v3756_v14  ;;  %2978 = vmatpush1.bf16.msra.mxu1 %v3765_v16 }
 0x250   :  { %2948 = vmatprep.subr.bf16.mxu0 %v3760_v15  ;;  %2980 = vmatprep.subr.bf16.mxu1 %v3769_v17 }
 0x253   :  { %2950 = vmatpush1.bf16.msra.mxu0 %v3774_v18  ;;  %2982 = vmatpush1.bf16.msra.mxu1 %v3783_v20 }
 0x254   :  { %2952 = vmatprep.subr.bf16.mxu0 %v3778_v19  ;;  %2984 = vmatprep.subr.bf16.mxu1 %v3787_v21 }
 0x257   :  { %2954 = vmatpush1.bf16.msra.mxu0 %v3792_v22  ;;  %2986 = vmatpush1.bf16.msra.mxu1 %v3801_v24 }
 0x258   :  { %2956 = vmatprep.subr.bf16.mxu0 %v3796_v23  ;;  %2988 = vmatprep.subr.bf16.mxu1 %v3805_v26 }
 0x25b   :  { %2958 = vmatpush1.bf16.msra.mxu0 %v3810_v29  ;;  %2990 = vmatpush1.bf16.msra.mxu1 %v3816_v32 }
 0x25c   :  { %2992 = vmatprep.subr.bf16.mxu0 %v3679_v58  ;;  %3024 = vmatprep.subr.bf16.mxu1 %v3689_v62 }
 0x311   :  { %v939_v42 = vpop.f32.mrb[4].mxu0  ;;  %v1010_v43 = vpop.f32.mrb[4].mxu1 }
 0x312   :  { %v1015_v44 = vadd.f32 %v939_v42, %v805_v40  ;;  %v941_v46 = vpop.f32.mrb[5].mxu0  ;;  %v1012_v47 = vpop.f32.mrb[5].mxu1  ;;  %v1017_v57 = vadd.f32 %v1010_v43, %v807_v54 }
 0x313   :  { %v1016_v48 = vadd.f32 %v941_v46, %v806_v41  ;;  %v1018_v53 = vadd.f32 %v1012_v47, %v808_v51 }
 0x314   :  { %v2682_v49 = vmul.f32 -1.442695, %v1015_v44 }
 0x315   :  { %v2683_v50 = vmul.f32 -1.442695, %v1016_v48  ;;  %v2684_v55 = vmul.f32 -1.442695, %v1018_v53 }
 0x316   :  { %3281 = vpow2.f32 %v2682_v49 }
 0x317   :  { %3283 = vpow2.f32 %v2683_v50 }
 0x318   :  { %3285 = vpow2.f32 %v2684_v55  ;;  %v2689_v55 = vld [vmem:[%s4375_s0 + $0x30] sm:$0xff] }
 0x319   :  { %3287 = vtanh.f32 %v1017_v57  ;;  %v1112_v57 = vunpack.c.l.bf16 %v2689_v55 }
 0x320   :  { %v3282_v61 = vpop.eup %3281 }
 0x321   :  { %v3284_v63 = vpop.eup %3283  ;;  %v1022_v28 = vadd.f32 1.0, %v3282_v61  ;;  %v1113_v61 = vunpack.c.h.bf16 %v2689_v55 }
 0x322   :  { %v1028_v25 = vadd.f32 1.0, %v3284_v63  ;;  %v3286_v27 = vpop.eup %3285 }
 0x323   :  { %3289 = vrcp.f32 %v1022_v28  ;;  %v3288_v30 = vpop.eup %3287  ;;  %v1035_v35 = vadd.f32 1.0, %v3286_v27  ;;  %v2690_v27 = vld [vmem:[%s4375_s0 + $0x38] sm:$0xff] }
 0x324   :  { %3291 = vrcp.f32 %v1028_v25 }
 0x325   :  { %3293 = vrcp.f32 %v1035_v35 }
 0x32d   :  { %v3290_v31 = vpop.eup %3289 }
 0x32e   :  { %v3292_v33 = vpop.eup %3291  ;;  %v1039_v34 = vmul.f32 %v3290_v31, %v3288_v30 }
 0x32f   :  { %v1038_v36 = vmul.f32 %v3292_v33, %v3941_v52  ;;  %v3294_v39 = vpop.eup %3293 }
 0x331   :  { %v4015_v38 = vadd.f32 %v1039_v34, %v1038_v36  ;;  %v1115_v36 = vunpack.c.h.bf16 %v2690_v27 }
 0x333   :  { %3295 = vtanh.f32 %v4015_v38 }
 0x33d   :  { %v3296_v40 = vpop.eup %3295 }
 0x33e   :  { %v1042_v41 = vmul.f32 %v3296_v40, %v3294_v39  ;;  %v1114_v40 = vunpack.c.l.bf16 %v2690_v27 }
 0x340   :  { %v1044_v42 = vcombine.high %v1042_v41, %v1042_v41  ;;  %v1051_v43 = vrot.slane %v1042_v41, %v3868_v37  ;;  %1245 = vmatmul.mubr.f32.vlgmr.msra.gmra.mrb[6].mxu0 %v1042_v41  ;;  %1316 = vmatmul.mubr.f32.vlgmr.msra.gmra.mrb[6].mxu1 %v1042_v41 }
 0x341   :  { %2994 = vmatpush1.bf16.msra.mxu0 %v3682_v56  ;;  %3026 = vmatpush1.bf16.msra.mxu1 %v3693_v59 }
 0x342   :  { %v1058_v44 = vrot.slane %v1044_v42, %v3868_v37  ;;  %v1059_v52 = vcombine.high %v1051_v43, %v1051_v43  ;;  %v1067_v45 = vrot.slane %v1051_v43, %v3868_v37  ;;  %2685 = vst.sshfl [vmem:[%s4377_s2 + $0x2] sm:$0x1 pattern:$0x73625140] %v1051_v43  ;;  %2996 = vmatprep.subr.bf16.mxu0 %v3684_v60 }
 0x343   :  { %3028 = vmatprep.subr.bf16.mxu1 %v3700_v0  ;;  %1551 = vmatprep.mubr.f32.mxu0 %v3379_v5 }
 0x344   :  { %1622 = vmatprep.mubr.f32.mxu1 %v3379_v5  ;;  %v1060_v46 = vcombine.high %v1058_v44, %v1058_v44  ;;  %v1074_v47 = vrot.slane %v1058_v44, %v3868_v37  ;;  %v1081_v48 = vrot.slane %v1059_v52, %v3868_v37  ;;  %v1089_v49 = vcombine.high %v1067_v45, %v1067_v45 }
 0x345   :  { %2686 = vst.sshfl [vmem:[%s4377_s2 + $0xa] sm:$0x1 pattern:$0x73625140] %v1059_v52  ;;  %2998 = vmatpush1.bf16.msra.mxu0 %v3697_v1  ;;  %3030 = vmatpush1.bf16.msra.mxu1 %v3709_v2 }
 0x346   :  { %2687 = vst.sshfl [vmem:[%s4377_s2 + $0x22] sm:$0x1 pattern:$0x73625140] %v1058_v44  ;;  %v1088_v50 = vrot.slane %v1060_v46, %v3868_v37  ;;  %v1090_v51 = vcombine.high %v1074_v47, %v1074_v47  ;;  %v1091_v53 = vcombine.high %v1081_v48, %v1081_v48  ;;  %1103 = vst [vmem:[%s4377_s2 + $0x12] sm:$0x1] %v1089_v49  ;;  %3000 = vmatprep.subr.bf16.mxu0 %v3703_v4 }
 0x347   :  { %2688 = vst.sshfl [vmem:[%s4377_s2 + $0x2a] sm:$0x1 pattern:$0x73625140] %v1060_v46  ;;  %3032 = vmatprep.subr.bf16.mxu1 %v3713_v3 }
 0x348   :  { %v1092_v54 = vcombine.high %v1088_v50, %v1088_v50  ;;  %1104 = vst [vmem:[%s4377_s2 + $0x1a] sm:$0x1] %v1091_v53  ;;  %1107 = vst [vmem:[%s4377_s2 + $0x32] sm:$0x1] %v1090_v51 }
 0x349   :  { %3002 = vmatpush1.bf16.msra.mxu0 %v3719_v6  ;;  %3034 = vmatpush1.bf16.msra.mxu1 %v3729_v8 }
 0x34a   :  { %1108 = vst [vmem:[%s4377_s2 + $0x3a] sm:$0x1] %v1092_v54  ;;  %3004 = vmatprep.subr.bf16.mxu0 %v3723_v7  ;;  %3036 = vmatprep.subr.bf16.mxu1 %v3733_v9 }
 0x34d   :  { %3006 = vmatpush1.bf16.msra.mxu0 %v3738_v10  ;;  %3038 = vmatpush1.bf16.msra.mxu1 %v3747_v12 }
 0x34e   :  { %3008 = vmatprep.subr.bf16.mxu0 %v3742_v11  ;;  %3040 = vmatprep.subr.bf16.mxu1 %v3751_v13 }
 0x351   :  { %3010 = vmatpush1.bf16.msra.mxu0 %v3756_v14  ;;  %3042 = vmatpush1.bf16.msra.mxu1 %v3765_v16 }
 0x352   :  { %3012 = vmatprep.subr.bf16.mxu0 %v3760_v15  ;;  %3044 = vmatprep.subr.bf16.mxu1 %v3769_v17 }
 0x355   :  { %3014 = vmatpush1.bf16.msra.mxu0 %v3774_v18  ;;  %3046 = vmatpush1.bf16.msra.mxu1 %v3783_v20 }
 0x356   :  { %3016 = vmatprep.subr.bf16.mxu0 %v3778_v19  ;;  %3048 = vmatprep.subr.bf16.mxu1 %v3787_v21 }
 0x359   :  { %3018 = vmatpush1.bf16.msra.mxu0 %v3792_v22  ;;  %3050 = vmatpush1.bf16.msra.mxu1 %v3801_v24 }
 0x35a   :  { %3020 = vmatprep.subr.bf16.mxu0 %v3796_v23  ;;  %3052 = vmatprep.subr.bf16.mxu1 %v3805_v26 }
 0x35d   :  { %3022 = vmatpush1.bf16.msra.mxu0 %v3810_v29  ;;  %3054 = vmatpush1.bf16.msra.mxu1 %v3816_v32 }
 0x35e   :  { %3056 = vmatprep.subr.bf16.mxu0 %v3679_v58  ;;  %3088 = vmatprep.subr.bf16.mxu1 %v3689_v62 }
 0x413   :  { %v1246_v63 = vpop.f32.mrb[6].mxu0  ;;  %v1317_v28 = vpop.f32.mrb[6].mxu1 }
 0x414   :  { %v1322_v25 = vadd.f32 %v1246_v63, %v1112_v57  ;;  %v1248_v30 = vpop.f32.mrb[7].mxu0  ;;  %v1319_v31 = vpop.f32.mrb[7].mxu1  ;;  %v1324_v42 = vadd.f32 %v1317_v28, %v1114_v40 }
 0x415   :  { %v1323_v33 = vadd.f32 %v1248_v30, %v1113_v61  ;;  %v1325_v39 = vadd.f32 %v1319_v31, %v1115_v36 }
 0x416   :  { %v2691_v34 = vmul.f32 -1.442695, %v1322_v25 }
 0x417   :  { %v2692_v35 = vmul.f32 -1.442695, %v1323_v33  ;;  %v2693_v41 = vmul.f32 -1.442695, %v1325_v39 }
 0x418   :  { %3297 = vpow2.f32 %v2691_v34 }
 0x419   :  { %3299 = vpow2.f32 %v2692_v35 }
 0x41a   :  { %3301 = vpow2.f32 %v2693_v41  ;;  %v2698_v41 = vld [vmem:[%s4375_s0 + $0x40] sm:$0xff] }
 0x41b   :  { %3303 = vtanh.f32 %v1324_v42  ;;  %v1419_v42 = vunpack.c.l.bf16 %v2698_v41 }
 0x422   :  { %v3298_v43 = vpop.eup %3297 }
 0x423   :  { %v3300_v44 = vpop.eup %3299  ;;  %v1329_v52 = vadd.f32 1.0, %v3298_v43  ;;  %v1420_v43 = vunpack.c.h.bf16 %v2698_v41 }
 0x424   :  { %v1335_v45 = vadd.f32 1.0, %v3300_v44  ;;  %v3302_v46 = vpop.eup %3301 }
 0x425   :  { %3305 = vrcp.f32 %v1329_v52  ;;  %v3304_v47 = vpop.eup %3303  ;;  %v1342_v51 = vadd.f32 1.0, %v3302_v46  ;;  %v2699_v46 = vld [vmem:[%s4375_s0 + $0x48] sm:$0xff] }
 0x426   :  { %3307 = vrcp.f32 %v1335_v45 }
 0x427   :  { %3309 = vrcp.f32 %v1342_v51 }
 0x42f   :  { %v3306_v48 = vpop.eup %3305 }
 0x430   :  { %v3308_v49 = vpop.eup %3307  ;;  %v1346_v50 = vmul.f32 %v3306_v48, %v3304_v47 }
 0x431   :  { %v1345_v53 = vmul.f32 %v3308_v49, %v4015_v38  ;;  %v3310_v55 = vpop.eup %3309 }
 0x433   :  { %v4089_v54 = vadd.f32 %v1346_v50, %v1345_v53  ;;  %v1422_v53 = vunpack.c.h.bf16 %v2699_v46 }
 0x435   :  { %3311 = vtanh.f32 %v4089_v54 }
 0x43f   :  { %v3312_v57 = vpop.eup %3311 }
 0x440   :  { %v1349_v61 = vmul.f32 %v3312_v57, %v3310_v55  ;;  %v1421_v57 = vunpack.c.l.bf16 %v2699_v46 }
 0x442   :  { %v1351_v63 = vcombine.high %v1349_v61, %v1349_v61  ;;  %v1358_v28 = vrot.slane %v1349_v61, %v3868_v37  ;;  %1552 = vmatmul.mubr.f32.vlgmr.msra.gmra.mrb[8].mxu0 %v1349_v61  ;;  %1623 = vmatmul.mubr.f32.vlgmr.msra.gmra.mrb[8].mxu1 %v1349_v61 }
 0x443   :  { %3058 = vmatpush1.bf16.msra.mxu0 %v3682_v56  ;;  %3090 = vmatpush1.bf16.msra.mxu1 %v3693_v59 }
 0x444   :  { %v1365_v25 = vrot.slane %v1351_v63, %v3868_v37  ;;  %v1366_v38 = vcombine.high %v1358_v28, %v1358_v28  ;;  %v1374_v27 = vrot.slane %v1358_v28, %v3868_v37  ;;  %2694 = vst.sshfl [vmem:[%s4377_s2 + $0x3] sm:$0x1 pattern:$0x73625140] %v1358_v28  ;;  %3060 = vmatprep.subr.bf16.mxu0 %v3684_v60 }
 0x445   :  { %3092 = vmatprep.subr.bf16.mxu1 %v3700_v0  ;;  %1858 = vmatprep.mubr.f32.mxu0 %v3379_v5 }
 0x446   :  { %1929 = vmatprep.mubr.f32.mxu1 %v3379_v5  ;;  %v1367_v30 = vcombine.high %v1365_v25, %v1365_v25  ;;  %v1381_v31 = vrot.slane %v1365_v25, %v3868_v37  ;;  %v1388_v33 = vrot.slane %v1366_v38, %v3868_v37  ;;  %v1396_v34 = vcombine.high %v1374_v27, %v1374_v27 }
 0x447   :  { %2695 = vst.sshfl [vmem:[%s4377_s2 + $0xb] sm:$0x1 pattern:$0x73625140] %v1366_v38  ;;  %3062 = vmatpush1.bf16.msra.mxu0 %v3697_v1  ;;  %3094 = vmatpush1.bf16.msra.mxu1 %v3709_v2 }
 0x448   :  { %2696 = vst.sshfl [vmem:[%s4377_s2 + $0x23] sm:$0x1 pattern:$0x73625140] %v1365_v25  ;;  %v1395_v35 = vrot.slane %v1367_v30, %v3868_v37  ;;  %v1397_v36 = vcombine.high %v1381_v31, %v1381_v31  ;;  %v1398_v39 = vcombine.high %v1388_v33, %v1388_v33  ;;  %1410 = vst [vmem:[%s4377_s2 + $0x13] sm:$0x1] %v1396_v34  ;;  %3064 = vmatprep.subr.bf16.mxu0 %v3703_v4 }
 0x449   :  { %2697 = vst.sshfl [vmem:[%s4377_s2 + $0x2b] sm:$0x1 pattern:$0x73625140] %v1367_v30  ;;  %3096 = vmatprep.subr.bf16.mxu1 %v3713_v3 }
 0x44a   :  { %v1399_v40 = vcombine.high %v1395_v35, %v1395_v35  ;;  %1411 = vst [vmem:[%s4377_s2 + $0x1b] sm:$0x1] %v1398_v39  ;;  %1414 = vst [vmem:[%s4377_s2 + $0x33] sm:$0x1] %v1397_v36 }
 0x44b   :  { %3066 = vmatpush1.bf16.msra.mxu0 %v3719_v6  ;;  %3098 = vmatpush1.bf16.msra.mxu1 %v3729_v8 }
 0x44c   :  { %1415 = vst [vmem:[%s4377_s2 + $0x3b] sm:$0x1] %v1399_v40  ;;  %3068 = vmatprep.subr.bf16.mxu0 %v3723_v7  ;;  %3100 = vmatprep.subr.bf16.mxu1 %v3733_v9 }
 0x44f   :  { %3070 = vmatpush1.bf16.msra.mxu0 %v3738_v10  ;;  %3102 = vmatpush1.bf16.msra.mxu1 %v3747_v12 }
 0x450   :  { %3072 = vmatprep.subr.bf16.mxu0 %v3742_v11  ;;  %3104 = vmatprep.subr.bf16.mxu1 %v3751_v13 }
 0x453   :  { %3074 = vmatpush1.bf16.msra.mxu0 %v3756_v14  ;;  %3106 = vmatpush1.bf16.msra.mxu1 %v3765_v16 }
 0x454   :  { %3076 = vmatprep.subr.bf16.mxu0 %v3760_v15  ;;  %3108 = vmatprep.subr.bf16.mxu1 %v3769_v17 }
 0x457   :  { %3078 = vmatpush1.bf16.msra.mxu0 %v3774_v18  ;;  %3110 = vmatpush1.bf16.msra.mxu1 %v3783_v20 }
 0x458   :  { %3080 = vmatprep.subr.bf16.mxu0 %v3778_v19  ;;  %3112 = vmatprep.subr.bf16.mxu1 %v3787_v21 }
 0x45b   :  { %3082 = vmatpush1.bf16.msra.mxu0 %v3792_v22  ;;  %3114 = vmatpush1.bf16.msra.mxu1 %v3801_v24 }
 0x45c   :  { %3084 = vmatprep.subr.bf16.mxu0 %v3796_v23  ;;  %3116 = vmatprep.subr.bf16.mxu1 %v3805_v26 }
 0x45f   :  { %3086 = vmatpush1.bf16.msra.mxu0 %v3810_v29  ;;  %3118 = vmatpush1.bf16.msra.mxu1 %v3816_v32 }
 0x460   :  { %3120 = vmatprep.subr.bf16.mxu0 %v3679_v58  ;;  %3152 = vmatprep.subr.bf16.mxu1 %v3689_v62 }
 0x515   :  { %v1553_v44 = vpop.f32.mrb[8].mxu0  ;;  %v1624_v52 = vpop.f32.mrb[8].mxu1 }
 0x516   :  { %v1629_v45 = vadd.f32 %v1553_v44, %v1419_v42  ;;  %v1555_v47 = vpop.f32.mrb[9].mxu0  ;;  %v1626_v48 = vpop.f32.mrb[9].mxu1  ;;  %v1631_v63 = vadd.f32 %v1624_v52, %v1421_v57 }
 0x517   :  { %v1630_v49 = vadd.f32 %v1555_v47, %v1420_v43  ;;  %v1632_v55 = vadd.f32 %v1626_v48, %v1422_v53 }
 0x518   :  { %v2700_v50 = vmul.f32 -1.442695, %v1629_v45 }
 0x519   :  { %v2701_v51 = vmul.f32 -1.442695, %v1630_v49  ;;  %v2702_v61 = vmul.f32 -1.442695, %v1632_v55 }
 0x51a   :  { %3313 = vpow2.f32 %v2700_v50 }
 0x51b   :  { %3315 = vpow2.f32 %v2701_v51 }
 0x51c   :  { %3317 = vpow2.f32 %v2702_v61  ;;  %v2707_v61 = vld [vmem:[%s4375_s0 + $0x50] sm:$0xff] }
 0x51d   :  { %3319 = vtanh.f32 %v1631_v63  ;;  %v1726_v63 = vunpack.c.l.bf16 %v2707_v61 }
 0x524   :  { %v3314_v28 = vpop.eup %3313 }
 0x525   :  { %v3316_v25 = vpop.eup %3315  ;;  %v1636_v38 = vadd.f32 1.0, %v3314_v28  ;;  %v1727_v28 = vunpack.c.h.bf16 %v2707_v61 }
 0x526   :  { %v1642_v27 = vadd.f32 1.0, %v3316_v25  ;;  %v3318_v30 = vpop.eup %3317 }
 0x527   :  { %3321 = vrcp.f32 %v1636_v38  ;;  %v3320_v31 = vpop.eup %3319  ;;  %v1649_v36 = vadd.f32 1.0, %v3318_v30  ;;  %v2708_v30 = vld [vmem:[%s4375_s0 + $0x58] sm:$0xff] }
 0x528   :  { %3323 = vrcp.f32 %v1642_v27 }
 0x529   :  { %3325 = vrcp.f32 %v1649_v36  ;;  %v1729_v36 = vunpack.c.h.bf16 %v2708_v30 }
 0x531   :  { %v3322_v33 = vpop.eup %3321 }
 0x532   :  { %v3324_v34 = vpop.eup %3323  ;;  %v1653_v35 = vmul.f32 %v3322_v33, %v3320_v31 }
 0x533   :  { %v1652_v39 = vmul.f32 %v3324_v34, %v4089_v54  ;;  %v3326_v41 = vpop.eup %3325 }
 0x535   :  { %v4163_v40 = vadd.f32 %v1653_v35, %v1652_v39  ;;  %v1728_v39 = vunpack.c.l.bf16 %v2708_v30 }
 0x537   :  { %3327 = vtanh.f32 %v4163_v40 }
 0x541   :  { %v3328_v42 = vpop.eup %3327 }
 0x542   :  { %v1656_v43 = vmul.f32 %v3328_v42, %v3326_v41 }
 0x544   :  { %v1658_v44 = vcombine.high %v1656_v43, %v1656_v43  ;;  %v1665_v52 = vrot.slane %v1656_v43, %v3868_v37  ;;  %1859 = vmatmul.mubr.f32.vlgmr.msra.gmra.mrb[10].mxu0 %v1656_v43  ;;  %1930 = vmatmul.mubr.f32.vlgmr.msra.gmra.mrb[10].mxu1 %v1656_v43 }
 0x545   :  { %3122 = vmatpush1.bf16.msra.mxu0 %v3682_v56  ;;  %3154 = vmatpush1.bf16.msra.mxu1 %v3693_v59 }
 0x546   :  { %v1672_v45 = vrot.slane %v1658_v44, %v3868_v37  ;;  %v1673_v54 = vcombine.high %v1665_v52, %v1665_v52  ;;  %v1681_v46 = vrot.slane %v1665_v52, %v3868_v37  ;;  %2703 = vst.sshfl [vmem:[%s4377_s2 + $0x4] sm:$0x1 pattern:$0x73625140] %v1665_v52  ;;  %3124 = vmatprep.subr.bf16.mxu0 %v3684_v60 }
 0x547   :  { %3156 = vmatprep.subr.bf16.mxu1 %v3700_v0  ;;  %2165 = vmatprep.mubr.f32.mxu0 %v3379_v5 }
 0x548   :  { %2236 = vmatprep.mubr.f32.mxu1 %v3379_v5  ;;  %v1674_v47 = vcombine.high %v1672_v45, %v1672_v45  ;;  %v1688_v48 = vrot.slane %v1672_v45, %v3868_v37  ;;  %v1695_v49 = vrot.slane %v1673_v54, %v3868_v37  ;;  %v1703_v50 = vcombine.high %v1681_v46, %v1681_v46 }
 0x549   :  { %2704 = vst.sshfl [vmem:[%s4377_s2 + $0xc] sm:$0x1 pattern:$0x73625140] %v1673_v54  ;;  %3126 = vmatpush1.bf16.msra.mxu0 %v3697_v1  ;;  %3158 = vmatpush1.bf16.msra.mxu1 %v3709_v2 }
 0x54a   :  { %2705 = vst.sshfl [vmem:[%s4377_s2 + $0x24] sm:$0x1 pattern:$0x73625140] %v1672_v45  ;;  %v1702_v51 = vrot.slane %v1674_v47, %v3868_v37  ;;  %v1704_v53 = vcombine.high %v1688_v48, %v1688_v48  ;;  %v1705_v55 = vcombine.high %v1695_v49, %v1695_v49  ;;  %1717 = vst [vmem:[%s4377_s2 + $0x14] sm:$0x1] %v1703_v50  ;;  %3128 = vmatprep.subr.bf16.mxu0 %v3703_v4 }
 0x54b   :  { %2706 = vst.sshfl [vmem:[%s4377_s2 + $0x2c] sm:$0x1 pattern:$0x73625140] %v1674_v47  ;;  %3160 = vmatprep.subr.bf16.mxu1 %v3713_v3 }
 0x54c   :  { %v1706_v57 = vcombine.high %v1702_v51, %v1702_v51  ;;  %1718 = vst [vmem:[%s4377_s2 + $0x1c] sm:$0x1] %v1705_v55  ;;  %1721 = vst [vmem:[%s4377_s2 + $0x34] sm:$0x1] %v1704_v53 }
 0x54d   :  { %3130 = vmatpush1.bf16.msra.mxu0 %v3719_v6  ;;  %3162 = vmatpush1.bf16.msra.mxu1 %v3729_v8 }
 0x54e   :  { %1722 = vst [vmem:[%s4377_s2 + $0x3c] sm:$0x1] %v1706_v57  ;;  %3132 = vmatprep.subr.bf16.mxu0 %v3723_v7  ;;  %3164 = vmatprep.subr.bf16.mxu1 %v3733_v9 }
 0x551   :  { %3134 = vmatpush1.bf16.msra.mxu0 %v3738_v10  ;;  %3166 = vmatpush1.bf16.msra.mxu1 %v3747_v12 }
 0x552   :  { %3136 = vmatprep.subr.bf16.mxu0 %v3742_v11  ;;  %3168 = vmatprep.subr.bf16.mxu1 %v3751_v13 }
 0x555   :  { %3138 = vmatpush1.bf16.msra.mxu0 %v3756_v14  ;;  %3170 = vmatpush1.bf16.msra.mxu1 %v3765_v16 }
 0x556   :  { %3140 = vmatprep.subr.bf16.mxu0 %v3760_v15  ;;  %3172 = vmatprep.subr.bf16.mxu1 %v3769_v17 }
 0x559   :  { %3142 = vmatpush1.bf16.msra.mxu0 %v3774_v18  ;;  %3174 = vmatpush1.bf16.msra.mxu1 %v3783_v20 }
 0x55a   :  { %3144 = vmatprep.subr.bf16.mxu0 %v3778_v19  ;;  %3176 = vmatprep.subr.bf16.mxu1 %v3787_v21 }
 0x55d   :  { %3146 = vmatpush1.bf16.msra.mxu0 %v3792_v22  ;;  %3178 = vmatpush1.bf16.msra.mxu1 %v3801_v24 }
 0x55e   :  { %3148 = vmatprep.subr.bf16.mxu0 %v3796_v23  ;;  %3180 = vmatprep.subr.bf16.mxu1 %v3805_v26 }
 0x561   :  { %3150 = vmatpush1.bf16.msra.mxu0 %v3810_v29  ;;  %3182 = vmatpush1.bf16.msra.mxu1 %v3816_v32 }
 0x562   :  { %3184 = vmatprep.subr.bf16.mxu0 %v3679_v58  ;;  %3216 = vmatprep.subr.bf16.mxu1 %v3689_v62 }
 0x617   :  { %v1860_v25 = vpop.f32.mrb[10].mxu0  ;;  %v1931_v38 = vpop.f32.mrb[10].mxu1 }
 0x618   :  { %v1936_v27 = vadd.f32 %v1860_v25, %v1726_v63  ;;  %v1862_v31 = vpop.f32.mrb[11].mxu0  ;;  %v1933_v33 = vpop.f32.mrb[11].mxu1  ;;  %v1938_v42 = vadd.f32 %v1931_v38, %v1728_v39 }
 0x619   :  { %v1937_v34 = vadd.f32 %v1862_v31, %v1727_v28  ;;  %v1939_v62 = vadd.f32 %v1933_v33, %v1729_v36 }
 0x61a   :  { %v2709_v35 = vmul.f32 -1.442695, %v1936_v27 }
 0x61b   :  { %v2710_v58 = vmul.f32 -1.442695, %v1937_v34  ;;  %v2711_v41 = vmul.f32 -1.442695, %v1939_v62 }
 0x61c   :  { %3329 = vpow2.f32 %v2709_v35 }
 0x61d   :  { %3331 = vpow2.f32 %v2710_v58 }
 0x61e   :  { %3333 = vpow2.f32 %v2711_v41 }
 0x61f   :  { %3335 = vtanh.f32 %v1938_v42 }
 0x626   :  { %v3330_v43 = vpop.eup %3329 }
 0x627   :  { %v3332_v44 = vpop.eup %3331  ;;  %v1943_v52 = vadd.f32 1.0, %v3330_v43 }
 0x628   :  { %v1949_v45 = vadd.f32 1.0, %v3332_v44  ;;  %v3334_v54 = vpop.eup %3333 }
 0x629   :  { %3337 = vrcp.f32 %v1943_v52  ;;  %v3336_v46 = vpop.eup %3335  ;;  %v1956_v50 = vadd.f32 1.0, %v3334_v54 }
 0x62a   :  { %3339 = vrcp.f32 %v1949_v45 }
 0x62b   :  { %3341 = vrcp.f32 %v1956_v50 }
 0x633   :  { %v3338_v47 = vpop.eup %3337 }
 0x634   :  { %v3340_v48 = vpop.eup %3339  ;;  %v1960_v49 = vmul.f32 %v3338_v47, %v3336_v46 }
 0x635   :  { %v1959_v51 = vmul.f32 %v3340_v48, %v4163_v40  ;;  %v3342_v55 = vpop.eup %3341 }
 0x637   :  { %v4237_v53 = vadd.f32 %v1960_v49, %v1959_v51  ;;  %v2725_v51 = vld [vmem:[%s4375_s0 + $0x70] sm:$0xff] }
 0x639   :  { %3343 = vtanh.f32 %v4237_v53 }
 0x643   :  { %v3344_v57 = vpop.eup %3343 }
 0x644   :  { %v1963_v61 = vmul.f32 %v3344_v57, %v3342_v55  ;;  %v2341_v55 = vunpack.c.h.bf16 %v2725_v51 }
 0x646   :  { %v1965_v63 = vcombine.high %v1963_v61, %v1963_v61  ;;  %v1972_v28 = vrot.slane %v1963_v61, %v3868_v37  ;;  %2166 = vmatmul.mubr.f32.vlgmr.msra.gmra.mrb[12].mxu0 %v1963_v61  ;;  %2237 = vmatmul.mubr.f32.vlgmr.msra.gmra.mrb[12].mxu1 %v1963_v61 }
 0x647   :  { %3186 = vmatpush1.bf16.msra.mxu0 %v3682_v56  ;;  %3218 = vmatpush1.bf16.msra.mxu1 %v3693_v59 }
 0x648   :  { %v1979_v25 = vrot.slane %v1965_v63, %v3868_v37  ;;  %v1980_v40 = vcombine.high %v1972_v28, %v1972_v28  ;;  %v1988_v38 = vrot.slane %v1972_v28, %v3868_v37  ;;  %2712 = vst.sshfl [vmem:[%s4377_s2 + $0x5] sm:$0x1 pattern:$0x73625140] %v1972_v28  ;;  %3188 = vmatprep.subr.bf16.mxu0 %v3684_v60  ;;  %v2726_v28 = vld [vmem:[%s4375_s0 + $0x78] sm:$0xff] }
 0x649   :  { %3220 = vmatprep.subr.bf16.mxu1 %v3700_v0  ;;  %2472 = vmatprep.mubr.f32.mxu0 %v3379_v5 }
 0x64a   :  { %2543 = vmatprep.mubr.f32.mxu1 %v3379_v5  ;;  %v1981_v56 = vcombine.high %v1979_v25, %v1979_v25  ;;  %v1995_v59 = vrot.slane %v1979_v25, %v3868_v37  ;;  %v2002_v27 = vrot.slane %v1980_v40, %v3868_v37  ;;  %v2010_v30 = vcombine.high %v1988_v38, %v1988_v38 }
 0x64b   :  { %2713 = vst.sshfl [vmem:[%s4377_s2 + $0xd] sm:$0x1 pattern:$0x73625140] %v1980_v40  ;;  %3190 = vmatpush1.bf16.msra.mxu0 %v3697_v1  ;;  %3222 = vmatpush1.bf16.msra.mxu1 %v3709_v2  ;;  %v2716_v1 = vld [vmem:[%s4375_s0 + $0x60] sm:$0xff] }
 0x64c   :  { %2714 = vst.sshfl [vmem:[%s4377_s2 + $0x25] sm:$0x1 pattern:$0x73625140] %v1979_v25  ;;  %v2009_v60 = vrot.slane %v1981_v56, %v3868_v37  ;;  %v2011_v0 = vcombine.high %v1995_v59, %v1995_v59  ;;  %v2012_v5 = vcombine.high %v2002_v27, %v2002_v27  ;;  %2024 = vst [vmem:[%s4377_s2 + $0x15] sm:$0x1] %v2010_v30  ;;  %3192 = vmatprep.subr.bf16.mxu0 %v3703_v4 }
 0x64d   :  { %2715 = vst.sshfl [vmem:[%s4377_s2 + $0x2d] sm:$0x1 pattern:$0x73625140] %v1981_v56  ;;  %3224 = vmatprep.subr.bf16.mxu1 %v3713_v3  ;;  %v2033_v4 = vunpack.c.l.bf16 %v2716_v1  ;;  %v2034_v2 = vunpack.c.h.bf16 %v2716_v1  ;;  %v2343_v27 = vunpack.c.h.bf16 %v2726_v28 }
 0x64e   :  { %v2013_v31 = vcombine.high %v2009_v60, %v2009_v60  ;;  %2025 = vst [vmem:[%s4377_s2 + $0x1d] sm:$0x1] %v2012_v5  ;;  %2028 = vst [vmem:[%s4377_s2 + $0x35] sm:$0x1] %v2011_v0  ;;  %v2342_v60 = vunpack.c.l.bf16 %v2726_v28 }
 0x64f   :  { %3194 = vmatpush1.bf16.msra.mxu0 %v3719_v6  ;;  %3226 = vmatpush1.bf16.msra.mxu1 %v3729_v8  ;;  %v2717_v8 = vld [vmem:[%s4375_s0 + $0x68] sm:$0xff] }
 0x650   :  { %2029 = vst [vmem:[%s4377_s2 + $0x3d] sm:$0x1] %v2013_v31  ;;  %3196 = vmatprep.subr.bf16.mxu0 %v3723_v7  ;;  %3228 = vmatprep.subr.bf16.mxu1 %v3733_v9 }
 0x653   :  { %3198 = vmatpush1.bf16.msra.mxu0 %v3738_v10  ;;  %3230 = vmatpush1.bf16.msra.mxu1 %v3747_v12 }
 0x654   :  { %3200 = vmatprep.subr.bf16.mxu0 %v3742_v11  ;;  %3232 = vmatprep.subr.bf16.mxu1 %v3751_v13 }
 0x657   :  { %3202 = vmatpush1.bf16.msra.mxu0 %v3756_v14  ;;  %3234 = vmatpush1.bf16.msra.mxu1 %v3765_v16  ;;  %v2036_v14 = vunpack.c.h.bf16 %v2717_v8  ;;  %v2035_v16 = vunpack.c.l.bf16 %v2717_v8 }
 0x658   :  { %3204 = vmatprep.subr.bf16.mxu0 %v3760_v15  ;;  %3236 = vmatprep.subr.bf16.mxu1 %v3769_v17 }
 0x65b   :  { %3206 = vmatpush1.bf16.msra.mxu0 %v3774_v18  ;;  %3238 = vmatpush1.bf16.msra.mxu1 %v3783_v20 }
 0x65c   :  { %3208 = vmatprep.subr.bf16.mxu0 %v3778_v19  ;;  %3240 = vmatprep.subr.bf16.mxu1 %v3787_v21 }
 0x65f   :  { %3210 = vmatpush1.bf16.msra.mxu0 %v3792_v22  ;;  %3242 = vmatpush1.bf16.msra.mxu1 %v3801_v24 }
 0x660   :  { %3212 = vmatprep.subr.bf16.mxu0 %v3796_v23  ;;  %3244 = vmatprep.subr.bf16.mxu1 %v3805_v26 }
 0x663   :  { %3214 = vmatpush1.bf16.msra.mxu0 %v3810_v29  ;;  %3246 = vmatpush1.bf16.msra.mxu1 %v3816_v32 }
 0x719   :  { %v2167_v3 = vpop.f32.mrb[12].mxu0  ;;  %v2238_v6 = vpop.f32.mrb[12].mxu1 }
 0x71a   :  { %v2243_v7 = vadd.f32 %v2167_v3, %v2033_v4  ;;  %v2169_v9 = vpop.f32.mrb[13].mxu0  ;;  %v2240_v10 = vpop.f32.mrb[13].mxu1  ;;  %v2245_v18 = vadd.f32 %v2238_v6, %v2035_v16 }
 0x71b   :  { %v2244_v11 = vadd.f32 %v2169_v9, %v2034_v2  ;;  %v2246_v15 = vadd.f32 %v2240_v10, %v2036_v14 }
 0x71c   :  { %v2718_v12 = vmul.f32 -1.442695, %v2243_v7 }
 0x71d   :  { %v2719_v13 = vmul.f32 -1.442695, %v2244_v11  ;;  %v2720_v17 = vmul.f32 -1.442695, %v2246_v15 }
 0x71e   :  { %3345 = vpow2.f32 %v2718_v12 }
 0x71f   :  { %3347 = vpow2.f32 %v2719_v13 }
 0x720   :  { %3349 = vpow2.f32 %v2720_v17 }
 0x721   :  { %3351 = vtanh.f32 %v2245_v18 }
 0x728   :  { %v3346_v19 = vpop.eup %3345 }
 0x729   :  { %v3348_v20 = vpop.eup %3347  ;;  %v2250_v21 = vadd.f32 1.0, %v3346_v19 }
 0x72a   :  { %v2256_v22 = vadd.f32 1.0, %v3348_v20  ;;  %v3350_v23 = vpop.eup %3349 }
 0x72b   :  { %3353 = vrcp.f32 %v2250_v21  ;;  %v3352_v24 = vpop.eup %3351  ;;  %v2263_v33 = vadd.f32 1.0, %v3350_v23 }
 0x72c   :  { %3355 = vrcp.f32 %v2256_v22 }
 0x72d   :  { %3357 = vrcp.f32 %v2263_v33 }
 0x735   :  { %v3354_v26 = vpop.eup %3353 }
 0x736   :  { %v3356_v29 = vpop.eup %3355  ;;  %v2267_v32 = vmul.f32 %v3354_v26, %v3352_v24 }
 0x737   :  { %v2266_v34 = vmul.f32 %v3356_v29, %v4237_v53  ;;  %v3358_v58 = vpop.eup %3357  ;;  %v2340_v53 = vunpack.c.l.bf16 %v2725_v51 }
 0x739   :  { %v2268_v35 = vadd.f32 %v2267_v32, %v2266_v34 }
 0x73b   :  { %3359 = vtanh.f32 %v2268_v35 }
 0x745   :  { %v3360_v36 = vpop.eup %3359 }
 0x746   :  { %v2270_v62 = vmul.f32 %v3360_v36, %v3358_v58 }
 0x748   :  { %v2272_v39 = vcombine.high %v2270_v62, %v2270_v62  ;;  %v2279_v41 = vrot.slane %v2270_v62, %v3868_v37  ;;  %2473 = vmatmul.mubr.f32.vlgmr.msra.gmra.mrb[14].mxu0 %v2270_v62  ;;  %2544 = vmatmul.mubr.f32.vlgmr.msra.gmra.mrb[14].mxu1 %v2270_v62 }
 0x74a   :  { %v2286_v42 = vrot.slane %v2272_v39, %v3868_v37  ;;  %v2287_v43 = vcombine.high %v2279_v41, %v2279_v41  ;;  %v2295_v44 = vrot.slane %v2279_v41, %v3868_v37  ;;  %2721 = vst.sshfl [vmem:[%s4377_s2 + $0x6] sm:$0x1 pattern:$0x73625140] %v2279_v41 }
 0x74c   :  { %v2288_v52 = vcombine.high %v2286_v42, %v2286_v42  ;;  %v2302_v45 = vrot.slane %v2286_v42, %v3868_v37  ;;  %v2309_v54 = vrot.slane %v2287_v43, %v3868_v37  ;;  %v2317_v46 = vcombine.high %v2295_v44, %v2295_v44  ;;  %2722 = vst.sshfl [vmem:[%s4377_s2 + $0xe] sm:$0x1 pattern:$0x73625140] %v2287_v43 }
 0x74d   :  { %2723 = vst.sshfl [vmem:[%s4377_s2 + $0x26] sm:$0x1 pattern:$0x73625140] %v2286_v42 }
 0x74e   :  { %v2316_v47 = vrot.slane %v2288_v52, %v3868_v37  ;;  %v2318_v48 = vcombine.high %v2302_v45, %v2302_v45  ;;  %v2319_v49 = vcombine.high %v2309_v54, %v2309_v54  ;;  %2331 = vst [vmem:[%s4377_s2 + $0x16] sm:$0x1] %v2317_v46  ;;  %2724 = vst.sshfl [vmem:[%s4377_s2 + $0x2e] sm:$0x1 pattern:$0x73625140] %v2288_v52 }
 0x750   :  { %v2320_v50 = vcombine.high %v2316_v47, %v2316_v47  ;;  %2332 = vst [vmem:[%s4377_s2 + $0x1e] sm:$0x1] %v2319_v49  ;;  %2335 = vst [vmem:[%s4377_s2 + $0x36] sm:$0x1] %v2318_v48 }
 0x752   :  { %2336 = vst [vmem:[%s4377_s2 + $0x3e] sm:$0x1] %v2320_v50 }
 0x81b   :  { %v2474_v57 = vpop.f32.mrb[14].mxu0  ;;  %v2545_v61 = vpop.f32.mrb[14].mxu1 }
 0x81c   :  { %v2550_v63 = vadd.f32 %v2474_v57, %v2340_v53  ;;  %v2476_v25 = vpop.f32.mrb[15].mxu0  ;;  %v2547_v40 = vpop.f32.mrb[15].mxu1  ;;  %v2552_v5 = vadd.f32 %v2545_v61, %v2342_v60 }
 0x81d   :  { %v2551_v38 = vadd.f32 %v2476_v25, %v2341_v55  ;;  %v2553_v30 = vadd.f32 %v2547_v40, %v2343_v27 }
 0x81e   :  { %v2727_v56 = vmul.f32 -1.442695, %v2550_v63 }
 0x81f   :  { %v2728_v59 = vmul.f32 -1.442695, %v2551_v38  ;;  %v2729_v0 = vmul.f32 -1.442695, %v2553_v30 }
 0x820   :  { %3361 = vpow2.f32 %v2727_v56 }
 0x821   :  { %3363 = vpow2.f32 %v2728_v59 }
 0x822   :  { %3365 = vpow2.f32 %v2729_v0 }
 0x823   :  { %3367 = vtanh.f32 %v2552_v5 }
 0x82a   :  { %v3362_v31 = vpop.eup %3361 }
 0x82b   :  { %v3364_v1 = vpop.eup %3363  ;;  %v2557_v4 = vadd.f32 1.0, %v3362_v31 }
 0x82c   :  { %v2563_v2 = vadd.f32 1.0, %v3364_v1  ;;  %v3366_v3 = vpop.eup %3365 }
 0x82d   :  { %3369 = vrcp.f32 %v2557_v4  ;;  %v3368_v6 = vpop.eup %3367  ;;  %v2570_v10 = vadd.f32 1.0, %v3366_v3 }
 0x82e   :  { %3371 = vrcp.f32 %v2563_v2 }
 0x82f   :  { %3373 = vrcp.f32 %v2570_v10 }
 0x837   :  { %v3370_v7 = vpop.eup %3369 }
 0x838   :  { %v3372_v8 = vpop.eup %3371  ;;  %v2574_v9 = vmul.f32 %v3370_v7, %v3368_v6 }
 0x839   :  { %v2573_v11 = vmul.f32 %v3372_v8, %v2268_v35  ;;  %v3374_v13 = vpop.eup %3373 }
 0x83b   :  { %v2575_v12 = vadd.f32 %v2574_v9, %v2573_v11 }
 0x83d   :  { %3375 = vtanh.f32 %v2575_v12 }
 0x847   :  { %v3376_v14 = vpop.eup %3375 }
 0x848   :  { %v2577_v15 = vmul.f32 %v3376_v14, %v3374_v13 }
 0x84a   :  { %v2579_v16 = vcombine.high %v2577_v15, %v2577_v15  ;;  %v2586_v17 = vrot.slane %v2577_v15, %v3868_v37 }
 0x84c   :  { %v2593_v18 = vrot.slane %v2579_v16, %v3868_v37  ;;  %v2594_v19 = vcombine.high %v2586_v17, %v2586_v17  ;;  %v2602_v20 = vrot.slane %v2586_v17, %v3868_v37  ;;  %2730 = vst.sshfl [vmem:[%s4377_s2 + $0x7] sm:$0x1 pattern:$0x73625140] %v2586_v17 }
 0x84e   :  { %v2595_v21 = vcombine.high %v2593_v18, %v2593_v18  ;;  %v2609_v22 = vrot.slane %v2593_v18, %v3868_v37  ;;  %v2616_v23 = vrot.slane %v2594_v19, %v3868_v37  ;;  %v2624_v24 = vcombine.high %v2602_v20, %v2602_v20  ;;  %2731 = vst.sshfl [vmem:[%s4377_s2 + $0xf] sm:$0x1 pattern:$0x73625140] %v2594_v19 }
 0x84f   :  { %2732 = vst.sshfl [vmem:[%s4377_s2 + $0x27] sm:$0x1 pattern:$0x73625140] %v2593_v18 }
 0x850   :  { %v2623_v26 = vrot.slane %v2595_v21, %v3868_v37  ;;  %v2625_v29 = vcombine.high %v2609_v22, %v2609_v22  ;;  %v2626_v32 = vcombine.high %v2616_v23, %v2616_v23  ;;  %2638 = vst [vmem:[%s4377_s2 + $0x17] sm:$0x1] %v2624_v24  ;;  %2733 = vst.sshfl [vmem:[%s4377_s2 + $0x2f] sm:$0x1 pattern:$0x73625140] %v2595_v21 }
 0x852   :  { %v2627_v33 = vcombine.high %v2623_v26, %v2623_v26  ;;  %2639 = vst [vmem:[%s4377_s2 + $0x1f] sm:$0x1] %v2626_v32  ;;  %2642 = vst [vmem:[%s4377_s2 + $0x37] sm:$0x1] %v2625_v29 }
 0x854   :  { %2643 = vst [vmem:[%s4377_s2 + $0x3f] sm:$0x1] %v2627_v33 }
 0x855   :  { %2650 = vsyncmov [#allocation5] }
 0x858   :  { %s2651_s10 = vpop.sfrf %2650 }
 0x859   :  { %p2734_p0 = scmp.ne.s32.totalorder %s2651_s10, 0 }
 0x85b   :  { %2655 = shalt.err (%p2734_p0)  }

</bundles_post_ra>
